<compile_context>
chip_gen: v5e
topology: v5e:2x2
jax: 0.10.0
libtpu: 0.0.40
codegen_flags: <defaults>
</compile_context>

<pallas_src>
import functools

import jax
import jax.numpy as jnp
from jax.experimental import pallas as pl
from jax.experimental.pallas import tpu as pltpu


def _round_up(a, b):
    return (a + b - 1) // b * b


def _vmem_limit_bytes():
    # ~75% of physical VMEM, capped at 100 MiB: ~96 MiB on v5e/v6e (128 MiB),
    # ~48 MiB on v7x (64 MiB) so compiler temporaries still have headroom.
    cap = 128 * 1024 * 1024
    try:
        info = pltpu.get_tpu_info()
        cap = int(getattr(info, "vmem_capacity_bytes", cap))
    except Exception:
        pass
    return min(cap * 3 // 4, 100 * 1024 * 1024)


# ----------------------------------------------------------------------------
# Kernel 1: embedding linear + cls token + sequence padding + key-padding bias
# grid = (Bp / block_b,): each step handles a (block_b, S, F) slab of x and
# writes a (block_b, Lp, H) bf16 activation slab (cls row 0, emb rows 1..S,
# zero pad rows) plus a lane-dense (block_b, 1, Lp) additive bias.
# ----------------------------------------------------------------------------
def _embed_kernel(x_ref, w_ref, b_ref, cls_ref, h_ref, bias_ref):
    x3 = x_ref[...]                                   # (bt, S, F) f32
    bt, s, f = x3.shape
    lp = h_ref.shape[1]
    hdim = h_ref.shape[2]

    x2 = x3.reshape(bt * s, f).astype(jnp.bfloat16)   # row slab for the MXU
    emb = (
        jnp.dot(x2, w_ref[...], preferred_element_type=jnp.float32)
        + b_ref[...]
    )                                                 # (bt*S, H) f32
    emb3 = emb.reshape(bt, s, hdim)

    cls_b = jnp.broadcast_to(cls_ref[...].reshape(1, 1, hdim), (bt, 1, hdim))
    parts = [cls_b, emb3]
    if lp > s + 1:
        parts.append(jnp.zeros((bt, lp - s - 1, hdim), jnp.float32))
    h_ref[...] = jnp.concatenate(parts, axis=1).astype(h_ref.dtype)

    # PyTorch: mask = (x.abs().sum(-1) != 0); key_padding_mask==True => key
    # ignored.  cls position gets 0 bias; padded seq positions are masked.
    row = jnp.sum(jnp.abs(x3), axis=-1)               # (bt, S) f32
    body = jnp.where(row != 0.0, jnp.float32(-1e30), jnp.float32(0.0))
    bparts = [jnp.zeros((bt, 1), jnp.float32), body]
    if lp > s + 1:
        bparts.append(jnp.full((bt, lp - s - 1), -1e30, jnp.float32))
    bias_ref[...] = jnp.concatenate(bparts, axis=-1).reshape(bt, 1, lp)


def embed_cls_mask(x, w_emb, b_emb, cls_token, *, Lp, block_b, vmem_limit):
    Bp, S, F = x.shape
    H = w_emb.shape[1]
    return pl.pallas_call(
        _embed_kernel,
        out_shape=(
            jax.ShapeDtypeStruct((Bp, Lp, H), jnp.bfloat16),
            jax.ShapeDtypeStruct((Bp, 1, Lp), jnp.float32),
        ),
        grid=(Bp // block_b,),
        in_specs=[
            pl.BlockSpec((block_b, S, F), lambda i: (i, 0, 0)),
            pl.BlockSpec((F, H), lambda i: (0, 0)),
            pl.BlockSpec((1, H), lambda i: (0, 0)),
            pl.BlockSpec((1, H), lambda i: (0, 0)),
        ],
        out_specs=(
            pl.BlockSpec((block_b, Lp, H), lambda i: (i, 0, 0)),
            pl.BlockSpec((block_b, 1, Lp), lambda i: (i, 0, 0)),
        ),
        compiler_params=pltpu.CompilerParams(
            dimension_semantics=("parallel",),
            vmem_limit_bytes=vmem_limit,
        ),
    )(x, w_emb, b_emb, cls_token)


# ----------------------------------------------------------------------------
# Kernel 2: ALL CustomTransformer layers fused in one pallas_call.
# grid = (Bp / block_b, num_layers).  The activation tile lives in a bf16 VMEM
# scratch across the layer axis (init from h0 at li==0); per-layer stacked
# weights stream in via the layer grid axis (double-buffered by default, so
# next layer's weight DMA hides behind this layer's compute).  Only the
# cls-token rows are written out at the last layer.
# ----------------------------------------------------------------------------
def _fused_layers_kernel(h0_ref, bias_ref, wqkv_ref, bqkv_ref, wo_ref, bo_ref,
                         w1_ref, b1_ref, w2_ref, b2_ref, out_ref,
                         act_ref, attn_ref, *, nhead):
    li = pl.program_id(1)
    bt, lp, e = act_ref.shape
    dh = e // nhead

    @pl.when(li == 0)
    def _():
        act_ref[...] = h0_ref[...]

    x2 = act_ref[...].reshape(bt * lp, e)                       # bf16 rows
    qkv = (
        jnp.dot(x2, wqkv_ref[0], preferred_element_type=jnp.float32)
        + bqkv_ref[0]
    )                                                           # (bt*lp, 3E)
    qkv3 = qkv.reshape(bt, lp, 3 * e)                           # tile-aligned
    # q scale (head_dim**-0.5) already folded into wqkv/bqkv at init time.
    q3 = qkv3[..., 0 * e:1 * e].astype(jnp.bfloat16)
    k3 = qkv3[..., 1 * e:2 * e].astype(jnp.bfloat16)
    v3 = qkv3[..., 2 * e:3 * e].astype(jnp.bfloat16)
    bias = bias_ref[...]                                        # (bt, 1, lp)

    # Per-head static loop; each head writes its (bt, lp, dh) result into the
    # VMEM scratch at its static lane offset (no list + concat materialization).
    for hh in range(nhead):
        sl = slice(hh * dh, (hh + 1) * dh)
        s = jnp.einsum("bqd,bkd->bqk", q3[..., sl], k3[..., sl],
                       preferred_element_type=jnp.float32)      # (bt, lp, lp)
        s = s + bias                                            # key-padding
        s = s - jnp.max(s, axis=-1, keepdims=True)
        p = jnp.exp(s)
        inv = pl.reciprocal(jnp.sum(p, axis=-1, keepdims=True), approx=True)
        p = (p * inv).astype(jnp.bfloat16)
        attn_ref[:, :, sl] = jnp.einsum("bqk,bkd->bqd", p, v3[..., sl],
                                        preferred_element_type=jnp.float32)

    attn2 = attn_ref[...].reshape(bt * lp, e).astype(jnp.bfloat16)
    a = (
        jnp.dot(attn2, wo_ref[0], preferred_element_type=jnp.float32)
        + bo_ref[0]
    )                                                           # out_proj
    h1 = jnp.maximum(
        jnp.dot(a.astype(jnp.bfloat16), w1_ref[0],
                preferred_element_type=jnp.float32) + b1_ref[0],
        0.0,
    )                                                           # relu(linear1)
    y = (
        jnp.dot(h1.astype(jnp.bfloat16), w2_ref[0],
                preferred_element_type=jnp.float32) + b2_ref[0]
    )                                                           # linear2
    act_ref[...] = y.reshape(bt, lp, e).astype(act_ref.dtype)   # stays in VMEM

    @pl.when(li == pl.num_programs(1) - 1)
    def _():
        # Only the cls-token (sequence position 0) output is returned.
        out_ref[...] = act_ref[:, 0:1, :].astype(out_ref.dtype)


def fused_transformer_layers(h0, bias3, params, *, nhead, num_layers,
                             block_b, vmem_limit):
    Bp, Lp, E = h0.shape
    FF = params["w1"].shape[-1]
    kernel = functools.partial(_fused_layers_kernel, nhead=nhead)
    return pl.pallas_call(
        kernel,
        out_shape=jax.ShapeDtypeStruct((Bp, 1, E), jnp.float32),
        grid=(Bp // block_b, num_layers),
        in_specs=[
            pl.BlockSpec((block_b, Lp, E), lambda bi, li: (bi, 0, 0)),   # h0
            pl.BlockSpec((block_b, 1, Lp), lambda bi, li: (bi, 0, 0)),   # bias
            pl.BlockSpec((1, E, 3 * E), lambda bi, li: (li, 0, 0)),      # wqkv
            pl.BlockSpec((1, 1, 3 * E), lambda bi, li: (li, 0, 0)),      # bqkv
            pl.BlockSpec((1, E, E), lambda bi, li: (li, 0, 0)),          # wo
            pl.BlockSpec((1, 1, E), lambda bi, li: (li, 0, 0)),          # bo
            pl.BlockSpec((1, E, FF), lambda bi, li: (li, 0, 0)),         # w1
            pl.BlockSpec((1, 1, FF), lambda bi, li: (li, 0, 0)),         # b1
            pl.BlockSpec((1, FF, E), lambda bi, li: (li, 0, 0)),         # w2
            pl.BlockSpec((1, 1, E), lambda bi, li: (li, 0, 0)),          # b2
        ],
        out_specs=pl.BlockSpec((block_b, 1, E), lambda bi, li: (bi, 0, 0)),
        scratch_shapes=[
            pltpu.VMEM((block_b, Lp, E), jnp.bfloat16),   # resident activations
            pltpu.VMEM((block_b, Lp, E), jnp.float32),    # per-head attn output
        ],
        compiler_params=pltpu.CompilerParams(
            dimension_semantics=("parallel", "arbitrary"),
            vmem_limit_bytes=vmem_limit,
        ),
    )(h0, bias3, params["wqkv"], params["bqkv"], params["wo"], params["bo"],
      params["w1"], params["b1"], params["w2"], params["b2"])


# ----------------------------------------------------------------------------
# Full forward pass
# ----------------------------------------------------------------------------
def transformer_encoder_forward(x, params, *, nhead, num_layers):
    B, S, _ = x.shape
    H = params["w_emb"].shape[1]
    L = S + 1
    Lp = _round_up(L, 8)                      # sublane-aligned sequence length

    # Batch tiling: ~512 activation rows per grid step, but keep >= 2 batch
    # grid steps whenever B >= 2 so both v7x TensorCores get work.
    block_b = max(1, min(B, 512 // max(Lp, 1)))
    if B >= 2:
        block_b = min(block_b, -(-B // 2))
    Bp = _round_up(B, block_b)
    if Bp != B:
        x = jnp.pad(x, ((0, Bp - B), (0, 0), (0, 0)))

    vmem_limit = _vmem_limit_bytes()
    h0, bias3 = embed_cls_mask(
        x, params["w_emb"], params["b_emb"], params["cls_token"],
        Lp=Lp, block_b=block_b, vmem_limit=vmem_limit)
    cls_out = fused_transformer_layers(
        h0, bias3, params, nhead=nhead, num_layers=num_layers,
        block_b=block_b, vmem_limit=vmem_limit)
    return cls_out[:B, 0, :]                  # (B, H) cls-token output


# ----------------------------------------------------------------------------
# Deterministic synthetic parameter initialization.  Weights are stored in
# bf16 (MXU-native, half the weight DMA), biases in f32, per-layer weights
# stacked along a leading num_layers axis, and the q scale folded into the
# in_proj q slice.
# NOTE: nn.TransformerEncoder deep-copies the layer so all PyTorch layers
# share initial values; here each layer gets its own deterministic values
# (forward-pass structure is unaffected).
# ----------------------------------------------------------------------------
def init_params(key, n_features, hidden_dim, num_layers, nhead,
                dim_feedforward=2048):
    keys = jax.random.split(key, 11)

    def rand(k, shape, scale=0.1):
        return scale * jax.random.normal(k, shape, dtype=jnp.float32)

    dh = hidden_dim // nhead
    qscale = dh ** -0.5
    wqkv = rand(keys[3], (num_layers, hidden_dim, 3 * hidden_dim))
    bqkv = rand(keys[4], (num_layers, 1, 3 * hidden_dim))
    # Fold q scale (head_dim**-0.5) into the q slice of in_proj (perf feedback).
    wqkv = wqkv.at[:, :, :hidden_dim].multiply(qscale)
    bqkv = bqkv.at[:, :, :hidden_dim].multiply(qscale)

    return {
        "w_emb": rand(keys[0], (n_features, hidden_dim)).astype(jnp.bfloat16),
        "b_emb": rand(keys[1], (1, hidden_dim)),
        "cls_token": rand(keys[2], (1, hidden_dim)),
        "wqkv": wqkv.astype(jnp.bfloat16),
        "bqkv": bqkv,
        "wo": rand(keys[5], (num_layers, hidden_dim, hidden_dim)).astype(jnp.bfloat16),
        "bo": rand(keys[6], (num_layers, 1, hidden_dim)),
        "w1": rand(keys[7], (num_layers, hidden_dim, dim_feedforward)).astype(jnp.bfloat16),
        "b1": rand(keys[8], (num_layers, 1, dim_feedforward)),
        "w2": rand(keys[9], (num_layers, dim_feedforward, hidden_dim)).astype(jnp.bfloat16),
        "b2": rand(keys[10], (num_layers, 1, hidden_dim)),
    }


if __name__ == "__main__":
    B, S, F = 2, 8, 6
    hidden_dim, nhead, num_layers = 32, 4, 2

    key = jax.random.PRNGKey(0)
    kx, kp = jax.random.split(key)
    x = jax.random.normal(kx, (B, S, F), dtype=jnp.float32)
    params = init_params(kp, F, hidden_dim, num_layers, nhead)

    fwd = jax.jit(functools.partial(
        transformer_encoder_forward, nhead=nhead, num_layers=num_layers))
    out = jax.block_until_ready(fwd(x, params))

    assert out.shape == (B, hidden_dim)
    assert bool(jnp.all(jnp.isfinite(out)))
    print("KERNEL_OK")
</pallas_src>

<mosaic_0001>
module attributes {stable_mosaic.version = 11 : i64} {
  func.func @_embed_kernel(%arg0: i32, %arg1: memref<1x8x6xf32, #tpu.memory_space<vmem>>, %arg2: memref<6x32xbf16, #tpu.memory_space<vmem>>, %arg3: memref<1x32xf32, #tpu.memory_space<vmem>>, %arg4: memref<1x32xf32, #tpu.memory_space<vmem>>, %arg5: memref<1x16x32xbf16, #tpu.memory_space<vmem>>, %arg6: memref<1x1x16xf32, #tpu.memory_space<vmem>>) attributes {dimension_semantics = [#tpu.dimension_semantics<parallel>], iteration_bounds = array<i64: 2>, scalar_prefetch = 0 : i64, scratch_operands = 0 : i64, tpu.core_type = #tpu.core_type<tc>, window_params = [{transform_indices = @transform_0, window_bounds = array<i64: 1, 8, 6>}, {pipeline_mode = #tpu.pipeline_mode<synchronous>, transform_indices = @transform_1, window_bounds = array<i64: 6, 32>}, {pipeline_mode = #tpu.pipeline_mode<synchronous>, transform_indices = @transform_2, window_bounds = array<i64: 1, 32>}, {pipeline_mode = #tpu.pipeline_mode<synchronous>, transform_indices = @transform_3, window_bounds = array<i64: 1, 32>}, {transform_indices = @transform_4, window_bounds = array<i64: 1, 16, 32>}, {transform_indices = @transform_5, window_bounds = array<i64: 1, 1, 16>}]} {
    %c0 = arith.constant 0 : index
    %c0_0 = arith.constant 0 : index
    %c0_1 = arith.constant 0 : index
    %0 = vector.load %arg1[%c0, %c0_0, %c0_1] : memref<1x8x6xf32, #tpu.memory_space<vmem>>, vector<1x8x6xf32>
    %1 = vector.shape_cast %0 : vector<1x8x6xf32> to vector<8x6xf32>
    %2 = arith.truncf %1 : vector<8x6xf32> to vector<8x6xbf16>
    %c0_2 = arith.constant 0 : index
    %c0_3 = arith.constant 0 : index
    %3 = vector.load %arg2[%c0_2, %c0_3] : memref<6x32xbf16, #tpu.memory_space<vmem>>, vector<6x32xbf16>
    %cst = arith.constant dense<0.000000e+00> : vector<8x32xf32>
    %4 = tpu.matmul %2, %3, %cst {dimension_numbers = #tpu.dot_dimension_numbers<[1], [0], [0], [1], [0, 0, 1, 1], [], []>} : vector<8x6xbf16>, vector<6x32xbf16>, vector<8x32xf32> -> vector<8x32xf32>
    %c0_4 = arith.constant 0 : index
    %c0_5 = arith.constant 0 : index
    %5 = vector.load %arg3[%c0_4, %c0_5] : memref<1x32xf32, #tpu.memory_space<vmem>>, vector<1x32xf32>
    %6 = vector.broadcast %5 : vector<1x32xf32> to vector<8x32xf32>
    %7 = arith.addf %4, %6 : vector<8x32xf32>
    %8 = vector.shape_cast %7 : vector<8x32xf32> to vector<1x8x32xf32>
    %c0_6 = arith.constant 0 : index
    %c0_7 = arith.constant 0 : index
    %9 = vector.load %arg4[%c0_6, %c0_7] : memref<1x32xf32, #tpu.memory_space<vmem>>, vector<1x32xf32>
    %10 = vector.shape_cast %9 : vector<1x32xf32> to vector<1x1x32xf32>
    %cst_8 = arith.constant 0.000000e+00 : f32
    %11 = vector.broadcast %cst_8 : f32 to vector<1x7x32xf32>
    %12 = tpu.concatenate %10, %8, %11 in 1 : vector<1x1x32xf32>, vector<1x8x32xf32>, vector<1x7x32xf32> -> vector<1x16x32xf32>
    %13 = arith.truncf %12 : vector<1x16x32xf32> to vector<1x16x32xbf16>
    %c0_9 = arith.constant 0 : index
    %c0_10 = arith.constant 0 : index
    %c0_11 = arith.constant 0 : index
    %14 = vector.load %arg5[%c0_9, %c0_10, %c0_11] : memref<1x16x32xbf16, #tpu.memory_space<vmem>>, vector<1x16x32xbf16>
    tpu.vector_store %arg5[%c0_9, %c0_10, %c0_11], %13 {strides = array<i32>} : memref<1x16x32xbf16, #tpu.memory_space<vmem>>, vector<1x16x32xbf16>,
    %15 = math.absf %0 : vector<1x8x6xf32>
    %cst_12 = arith.constant dense<0.000000e+00> : vector<1x8xf32>
    %16 = vector.multi_reduction <add>, %15, %cst_12 [2] : vector<1x8x6xf32> to vector<1x8xf32>
    %cst_13 = arith.constant 0.000000e+00 : f32
    %17 = vector.broadcast %cst_13 : f32 to vector<1x8xf32>
    %18 = arith.cmpf one, %16, %17 : vector<1x8xf32>
    %cst_14 = arith.constant -1.000000e+30 : f32
    %cst_15 = arith.constant 0.000000e+00 : f32
    %19 = vector.broadcast %cst_14 : f32 to vector<1x8xf32>
    %20 = vector.broadcast %cst_15 : f32 to vector<1x8xf32>
    %21 = arith.select %18, %19, %20 : vector<1x8xi1>, vector<1x8xf32>
    %cst_16 = arith.constant 0.000000e+00 : f32
    %22 = vector.broadcast %cst_16 : f32 to vector<1x1xf32>
    %cst_17 = arith.constant -1.000000e+30 : f32
    %23 = vector.broadcast %cst_17 : f32 to vector<1x7xf32>
    %24 = tpu.concatenate %22, %21, %23 in 1 : vector<1x1xf32>, vector<1x8xf32>, vector<1x7xf32> -> vector<1x16xf32>
    %25 = vector.shape_cast %24 : vector<1x16xf32> to vector<1x1x16xf32>
    %c0_18 = arith.constant 0 : index
    %c0_19 = arith.constant 0 : index
    %c0_20 = arith.constant 0 : index
    %26 = vector.load %arg6[%c0_18, %c0_19, %c0_20] : memref<1x1x16xf32, #tpu.memory_space<vmem>>, vector<1x1x16xf32>
    tpu.vector_store %arg6[%c0_18, %c0_19, %c0_20], %25 {strides = array<i32>} : memref<1x1x16xf32, #tpu.memory_space<vmem>>, vector<1x1x16xf32>,
    return
  }
  func.func @transform_0(%arg0: i32) -> (i32, i32, i32) {
    %c0_i32 = arith.constant 0 : i32
    %c0_i32_0 = arith.constant 0 : i32
    %c0_i32_1 = arith.constant 0 : i32
    return %arg0, %c0_i32, %c0_i32_0 : i32, i32, i32
  }
  func.func @transform_1(%arg0: i32) -> (i32, i32) {
    %c0_i32 = arith.constant 0 : i32
    %c0_i32_0 = arith.constant 0 : i32
    %c0_i32_1 = arith.constant 0 : i32
    return %c0_i32, %c0_i32_0 : i32, i32
  }
  func.func @transform_2(%arg0: i32) -> (i32, i32) {
    %c0_i32 = arith.constant 0 : i32
    %c0_i32_0 = arith.constant 0 : i32
    %c0_i32_1 = arith.constant 0 : i32
    return %c0_i32, %c0_i32_0 : i32, i32
  }
  func.func @transform_3(%arg0: i32) -> (i32, i32) {
    %c0_i32 = arith.constant 0 : i32
    %c0_i32_0 = arith.constant 0 : i32
    %c0_i32_1 = arith.constant 0 : i32
    return %c0_i32, %c0_i32_0 : i32, i32
  }
  func.func @transform_4(%arg0: i32) -> (i32, i32, i32) {
    %c0_i32 = arith.constant 0 : i32
    %c0_i32_0 = arith.constant 0 : i32
    %c0_i32_1 = arith.constant 0 : i32
    return %arg0, %c0_i32, %c0_i32_0 : i32, i32, i32
  }
  func.func @transform_5(%arg0: i32) -> (i32, i32, i32) {
    %c0_i32 = arith.constant 0 : i32
    %c0_i32_0 = arith.constant 0 : i32
    %c0_i32_1 = arith.constant 0 : i32
    return %arg0, %c0_i32, %c0_i32_0 : i32, i32, i32
  }
}

module attributes {stable_mosaic.version = 11 : i64} {
  func.func @_fused_layers_kernel(%arg0: i32, %arg1: i32, %arg2: memref<1x16x32xbf16, #tpu.memory_space<vmem>>, %arg3: memref<1x1x16xf32, #tpu.memory_space<vmem>>, %arg4: memref<1x32x96xbf16, #tpu.memory_space<vmem>>, %arg5: memref<1x1x96xf32, #tpu.memory_space<vmem>>, %arg6: memref<1x32x32xbf16, #tpu.memory_space<vmem>>, %arg7: memref<1x1x32xf32, #tpu.memory_space<vmem>>, %arg8: memref<1x32x2048xbf16, #tpu.memory_space<vmem>>, %arg9: memref<1x1x2048xf32, #tpu.memory_space<vmem>>, %arg10: memref<1x2048x32xbf16, #tpu.memory_space<vmem>>, %arg11: memref<1x1x32xf32, #tpu.memory_space<vmem>>, %arg12: memref<1x1x32xf32, #tpu.memory_space<vmem>>, %arg13: memref<1x16x32xbf16, #tpu.memory_space<vmem>>, %arg14: memref<1x16x32xf32, #tpu.memory_space<vmem>>) attributes {dimension_semantics = [#tpu.dimension_semantics<parallel>, #tpu.dimension_semantics<arbitrary>], iteration_bounds = array<i64: 2, 2>, scalar_prefetch = 0 : i64, scratch_operands = 2 : i64, tpu.core_type = #tpu.core_type<tc>, window_params = [{transform_indices = @transform_0, window_bounds = array<i64: 1, 16, 32>}, {transform_indices = @transform_1, window_bounds = array<i64: 1, 1, 16>}, {transform_indices = @transform_2, window_bounds = array<i64: 1, 32, 96>}, {transform_indices = @transform_3, window_bounds = array<i64: 1, 1, 96>}, {transform_indices = @transform_4, window_bounds = array<i64: 1, 32, 32>}, {transform_indices = @transform_5, window_bounds = array<i64: 1, 1, 32>}, {transform_indices = @transform_6, window_bounds = array<i64: 1, 32, 2048>}, {transform_indices = @transform_7, window_bounds = array<i64: 1, 1, 2048>}, {transform_indices = @transform_8, window_bounds = array<i64: 1, 2048, 32>}, {transform_indices = @transform_9, window_bounds = array<i64: 1, 1, 32>}, {transform_indices = @transform_10, window_bounds = array<i64: 1, 1, 32>}]} {
    %c0_i32 = arith.constant 0 : i32
    %0 = arith.cmpi eq, %arg1, %c0_i32 : i32
    %1 = arith.extui %0 : i1 to i32
    %c0_i32_0 = arith.constant 0 : i32
    %2 = arith.cmpi ne, %1, %c0_i32_0 : i32
    scf.if %2 {
      %c0_66 = arith.constant 0 : index
      %c0_67 = arith.constant 0 : index
      %c0_68 = arith.constant 0 : index
      %130 = vector.load %arg2[%c0_66, %c0_67, %c0_68] : memref<1x16x32xbf16, #tpu.memory_space<vmem>>, vector<1x16x32xbf16>
      %c0_69 = arith.constant 0 : index
      %c0_70 = arith.constant 0 : index
      %c0_71 = arith.constant 0 : index
      %131 = vector.load %arg13[%c0_69, %c0_70, %c0_71] : memref<1x16x32xbf16, #tpu.memory_space<vmem>>, vector<1x16x32xbf16>
      tpu.vector_store %arg13[%c0_69, %c0_70, %c0_71], %130 {strides = array<i32>} : memref<1x16x32xbf16, #tpu.memory_space<vmem>>, vector<1x16x32xbf16>,
    } else {
    }
    %c0 = arith.constant 0 : index
    %c0_1 = arith.constant 0 : index
    %c0_2 = arith.constant 0 : index
    %3 = vector.load %arg13[%c0, %c0_1, %c0_2] : memref<1x16x32xbf16, #tpu.memory_space<vmem>>, vector<1x16x32xbf16>
    %4 = vector.shape_cast %3 : vector<1x16x32xbf16> to vector<16x32xbf16>
    %c0_3 = arith.constant 0 : index
    %c0_4 = arith.constant 0 : index
    %c0_5 = arith.constant 0 : index
    %5 = vector.load %arg4[%c0_3, %c0_4, %c0_5] : memref<1x32x96xbf16, #tpu.memory_space<vmem>>, vector<1x32x96xbf16>
    %6 = vector.shape_cast %5 : vector<1x32x96xbf16> to vector<32x96xbf16>
    %cst = arith.constant dense<0.000000e+00> : vector<16x96xf32>
    %7 = tpu.matmul %4, %6, %cst {dimension_numbers = #tpu.dot_dimension_numbers<[1], [0], [0], [1], [0, 0, 1, 1], [], []>} : vector<16x32xbf16>, vector<32x96xbf16>, vector<16x96xf32> -> vector<16x96xf32>
    %c0_6 = arith.constant 0 : index
    %c0_7 = arith.constant 0 : index
    %c0_8 = arith.constant 0 : index
    %8 = vector.load %arg5[%c0_6, %c0_7, %c0_8] : memref<1x1x96xf32, #tpu.memory_space<vmem>>, vector<1x1x96xf32>
    %9 = vector.shape_cast %8 : vector<1x1x96xf32> to vector<1x96xf32>
    %10 = vector.broadcast %9 : vector<1x96xf32> to vector<16x96xf32>
    %11 = arith.addf %7, %10 : vector<16x96xf32>
    %12 = vector.shape_cast %11 : vector<16x96xf32> to vector<1x16x96xf32>
    %13 = vector.extract_strided_slice %12 {offsets = [0, 0, 0], sizes = [1, 16, 32], strides = [1, 1, 1]} : vector<1x16x96xf32> to vector<1x16x32xf32>
    %14 = arith.truncf %13 : vector<1x16x32xf32> to vector<1x16x32xbf16>
    %15 = vector.extract_strided_slice %12 {offsets = [0, 0, 32], sizes = [1, 16, 32], strides = [1, 1, 1]} : vector<1x16x96xf32> to vector<1x16x32xf32>
    %16 = arith.truncf %15 : vector<1x16x32xf32> to vector<1x16x32xbf16>
    %17 = vector.extract_strided_slice %12 {offsets = [0, 0, 64], sizes = [1, 16, 32], strides = [1, 1, 1]} : vector<1x16x96xf32> to vector<1x16x32xf32>
    %18 = arith.truncf %17 : vector<1x16x32xf32> to vector<1x16x32xbf16>
    %c0_9 = arith.constant 0 : index
    %c0_10 = arith.constant 0 : index
    %c0_11 = arith.constant 0 : index
    %19 = vector.load %arg3[%c0_9, %c0_10, %c0_11] : memref<1x1x16xf32, #tpu.memory_space<vmem>>, vector<1x1x16xf32>
    %20 = vector.extract_strided_slice %14 {offsets = [0, 0, 0], sizes = [1, 16, 8], strides = [1, 1, 1]} : vector<1x16x32xbf16> to vector<1x16x8xbf16>
    %21 = vector.extract_strided_slice %16 {offsets = [0, 0, 0], sizes = [1, 16, 8], strides = [1, 1, 1]} : vector<1x16x32xbf16> to vector<1x16x8xbf16>
    "tpu.trace_start"() <{level = 10 : i32, message = "bqd,bkd->bqk"}> : () -> ()
    %cst_12 = arith.constant dense<0.000000e+00> : vector<1x16x16xf32>
    %22 = tpu.matmul %20, %21, %cst_12 {dimension_numbers = #tpu.dot_dimension_numbers<[2], [2], [1], [1], [0, 0, 0, 1, 1, 1], [0], [0]>} : vector<1x16x8xbf16>, vector<1x16x8xbf16>, vector<1x16x16xf32> -> vector<1x16x16xf32>
    "tpu.trace_stop"() : () -> ()
    %23 = vector.broadcast %19 : vector<1x1x16xf32> to vector<1x16x16xf32>
    %24 = arith.addf %22, %23 : vector<1x16x16xf32>
    %cst_13 = arith.constant dense<0xFF800000> : vector<1x16xf32>
    %25 = vector.multi_reduction <maximumf>, %24, %cst_13 [2] : vector<1x16x16xf32> to vector<1x16xf32>
    %26 = vector.shape_cast %25 : vector<1x16xf32> to vector<1x16x1xf32>
    %27 = vector.broadcast %26 : vector<1x16x1xf32> to vector<1x16x16xf32>
    %28 = arith.subf %24, %27 : vector<1x16x16xf32>
    %29 = math.exp %28 : vector<1x16x16xf32>
    %cst_14 = arith.constant dense<0.000000e+00> : vector<1x16xf32>
    %30 = vector.multi_reduction <add>, %29, %cst_14 [2] : vector<1x16x16xf32> to vector<1x16xf32>
    %31 = vector.shape_cast %30 : vector<1x16xf32> to vector<1x16x1xf32>
    %32 = tpu.reciprocal %31 {approx = true} : vector<1x16x1xf32> -> vector<1x16x1xf32>
    %33 = vector.broadcast %32 : vector<1x16x1xf32> to vector<1x16x16xf32>
    %34 = arith.mulf %29, %33 : vector<1x16x16xf32>
    %35 = arith.truncf %34 : vector<1x16x16xf32> to vector<1x16x16xbf16>
    %36 = vector.extract_strided_slice %18 {offsets = [0, 0, 0], sizes = [1, 16, 8], strides = [1, 1, 1]} : vector<1x16x32xbf16> to vector<1x16x8xbf16>
    "tpu.trace_start"() <{level = 10 : i32, message = "bqk,bkd->bqd"}> : () -> ()
    %cst_15 = arith.constant dense<0.000000e+00> : vector<1x16x8xf32>
    %37 = tpu.matmul %35, %36, %cst_15 {dimension_numbers = #tpu.dot_dimension_numbers<[2], [1], [1], [2], [0, 0, 0, 1, 1, 2], [0], [0]>} : vector<1x16x16xbf16>, vector<1x16x8xbf16>, vector<1x16x8xf32> -> vector<1x16x8xf32>
    "tpu.trace_stop"() : () -> ()
    %c0_16 = arith.constant 0 : index
    %c0_17 = arith.constant 0 : index
    %c0_18 = arith.constant 0 : index
    %38 = vector.load %arg14[%c0_16, %c0_17, %c0_18] : memref<1x16x32xf32, #tpu.memory_space<vmem>>, vector<1x16x8xf32>
    tpu.vector_store %arg14[%c0_16, %c0_17, %c0_18], %37 {strides = array<i32>} : memref<1x16x32xf32, #tpu.memory_space<vmem>>, vector<1x16x8xf32>,
    %39 = vector.extract_strided_slice %14 {offsets = [0, 0, 8], sizes = [1, 16, 8], strides = [1, 1, 1]} : vector<1x16x32xbf16> to vector<1x16x8xbf16>
    %40 = vector.extract_strided_slice %16 {offsets = [0, 0, 8], sizes = [1, 16, 8], strides = [1, 1, 1]} : vector<1x16x32xbf16> to vector<1x16x8xbf16>
    "tpu.trace_start"() <{level = 10 : i32, message = "bqd,bkd->bqk"}> : () -> ()
    %cst_19 = arith.constant dense<0.000000e+00> : vector<1x16x16xf32>
    %41 = tpu.matmul %39, %40, %cst_19 {dimension_numbers = #tpu.dot_dimension_numbers<[2], [2], [1], [1], [0, 0, 0, 1, 1, 1], [0], [0]>} : vector<1x16x8xbf16>, vector<1x16x8xbf16>, vector<1x16x16xf32> -> vector<1x16x16xf32>
    "tpu.trace_stop"() : () -> ()
    %42 = vector.broadcast %19 : vector<1x1x16xf32> to vector<1x16x16xf32>
    %43 = arith.addf %41, %42 : vector<1x16x16xf32>
    %cst_20 = arith.constant dense<0xFF800000> : vector<1x16xf32>
    %44 = vector.multi_reduction <maximumf>, %43, %cst_20 [2] : vector<1x16x16xf32> to vector<1x16xf32>
    %45 = vector.shape_cast %44 : vector<1x16xf32> to vector<1x16x1xf32>
    %46 = vector.broadcast %45 : vector<1x16x1xf32> to vector<1x16x16xf32>
    %47 = arith.subf %43, %46 : vector<1x16x16xf32>
    %48 = math.exp %47 : vector<1x16x16xf32>
    %cst_21 = arith.constant dense<0.000000e+00> : vector<1x16xf32>
    %49 = vector.multi_reduction <add>, %48, %cst_21 [2] : vector<1x16x16xf32> to vector<1x16xf32>
    %50 = vector.shape_cast %49 : vector<1x16xf32> to vector<1x16x1xf32>
    %51 = tpu.reciprocal %50 {approx = true} : vector<1x16x1xf32> -> vector<1x16x1xf32>
    %52 = vector.broadcast %51 : vector<1x16x1xf32> to vector<1x16x16xf32>
    %53 = arith.mulf %48, %52 : vector<1x16x16xf32>
    %54 = arith.truncf %53 : vector<1x16x16xf32> to vector<1x16x16xbf16>
    %55 = vector.extract_strided_slice %18 {offsets = [0, 0, 8], sizes = [1, 16, 8], strides = [1, 1, 1]} : vector<1x16x32xbf16> to vector<1x16x8xbf16>
    "tpu.trace_start"() <{level = 10 : i32, message = "bqk,bkd->bqd"}> : () -> ()
    %cst_22 = arith.constant dense<0.000000e+00> : vector<1x16x8xf32>
    %56 = tpu.matmul %54, %55, %cst_22 {dimension_numbers = #tpu.dot_dimension_numbers<[2], [1], [1], [2], [0, 0, 0, 1, 1, 2], [0], [0]>} : vector<1x16x16xbf16>, vector<1x16x8xbf16>, vector<1x16x8xf32> -> vector<1x16x8xf32>
    "tpu.trace_stop"() : () -> ()
    %c0_23 = arith.constant 0 : index
    %c0_24 = arith.constant 0 : index
    %c8 = arith.constant 8 : index
    %57 = vector.load %arg14[%c0_23, %c0_24, %c8] : memref<1x16x32xf32, #tpu.memory_space<vmem>>, vector<1x16x8xf32>
    tpu.vector_store %arg14[%c0_23, %c0_24, %c8], %56 {strides = array<i32>} : memref<1x16x32xf32, #tpu.memory_space<vmem>>, vector<1x16x8xf32>,
    %58 = vector.extract_strided_slice %14 {offsets = [0, 0, 16], sizes = [1, 16, 8], strides = [1, 1, 1]} : vector<1x16x32xbf16> to vector<1x16x8xbf16>
    %59 = vector.extract_strided_slice %16 {offsets = [0, 0, 16], sizes = [1, 16, 8], strides = [1, 1, 1]} : vector<1x16x32xbf16> to vector<1x16x8xbf16>
    "tpu.trace_start"() <{level = 10 : i32, message = "bqd,bkd->bqk"}> : () -> ()
    %cst_25 = arith.constant dense<0.000000e+00> : vector<1x16x16xf32>
    %60 = tpu.matmul %58, %59, %cst_25 {dimension_numbers = #tpu.dot_dimension_numbers<[2], [2], [1], [1], [0, 0, 0, 1, 1, 1], [0], [0]>} : vector<1x16x8xbf16>, vector<1x16x8xbf16>, vector<1x16x16xf32> -> vector<1x16x16xf32>
    "tpu.trace_stop"() : () -> ()
    %61 = vector.broadcast %19 : vector<1x1x16xf32> to vector<1x16x16xf32>
    %62 = arith.addf %60, %61 : vector<1x16x16xf32>
    %cst_26 = arith.constant dense<0xFF800000> : vector<1x16xf32>
    %63 = vector.multi_reduction <maximumf>, %62, %cst_26 [2] : vector<1x16x16xf32> to vector<1x16xf32>
    %64 = vector.shape_cast %63 : vector<1x16xf32> to vector<1x16x1xf32>
    %65 = vector.broadcast %64 : vector<1x16x1xf32> to vector<1x16x16xf32>
    %66 = arith.subf %62, %65 : vector<1x16x16xf32>
    %67 = math.exp %66 : vector<1x16x16xf32>
    %cst_27 = arith.constant dense<0.000000e+00> : vector<1x16xf32>
    %68 = vector.multi_reduction <add>, %67, %cst_27 [2] : vector<1x16x16xf32> to vector<1x16xf32>
    %69 = vector.shape_cast %68 : vector<1x16xf32> to vector<1x16x1xf32>
    %70 = tpu.reciprocal %69 {approx = true} : vector<1x16x1xf32> -> vector<1x16x1xf32>
    %71 = vector.broadcast %70 : vector<1x16x1xf32> to vector<1x16x16xf32>
    %72 = arith.mulf %67, %71 : vector<1x16x16xf32>
    %73 = arith.truncf %72 : vector<1x16x16xf32> to vector<1x16x16xbf16>
    %74 = vector.extract_strided_slice %18 {offsets = [0, 0, 16], sizes = [1, 16, 8], strides = [1, 1, 1]} : vector<1x16x32xbf16> to vector<1x16x8xbf16>
    "tpu.trace_start"() <{level = 10 : i32, message = "bqk,bkd->bqd"}> : () -> ()
    %cst_28 = arith.constant dense<0.000000e+00> : vector<1x16x8xf32>
    %75 = tpu.matmul %73, %74, %cst_28 {dimension_numbers = #tpu.dot_dimension_numbers<[2], [1], [1], [2], [0, 0, 0, 1, 1, 2], [0], [0]>} : vector<1x16x16xbf16>, vector<1x16x8xbf16>, vector<1x16x8xf32> -> vector<1x16x8xf32>
    "tpu.trace_stop"() : () -> ()
    %c0_29 = arith.constant 0 : index
    %c0_30 = arith.constant 0 : index
    %c16 = arith.constant 16 : index
    %76 = vector.load %arg14[%c0_29, %c0_30, %c16] : memref<1x16x32xf32, #tpu.memory_space<vmem>>, vector<1x16x8xf32>
    tpu.vector_store %arg14[%c0_29, %c0_30, %c16], %75 {strides = array<i32>} : memref<1x16x32xf32, #tpu.memory_space<vmem>>, vector<1x16x8xf32>,
    %77 = vector.extract_strided_slice %14 {offsets = [0, 0, 24], sizes = [1, 16, 8], strides = [1, 1, 1]} : vector<1x16x32xbf16> to vector<1x16x8xbf16>
    %78 = vector.extract_strided_slice %16 {offsets = [0, 0, 24], sizes = [1, 16, 8], strides = [1, 1, 1]} : vector<1x16x32xbf16> to vector<1x16x8xbf16>
    "tpu.trace_start"() <{level = 10 : i32, message = "bqd,bkd->bqk"}> : () -> ()
    %cst_31 = arith.constant dense<0.000000e+00> : vector<1x16x16xf32>
    %79 = tpu.matmul %77, %78, %cst_31 {dimension_numbers = #tpu.dot_dimension_numbers<[2], [2], [1], [1], [0, 0, 0, 1, 1, 1], [0], [0]>} : vector<1x16x8xbf16>, vector<1x16x8xbf16>, vector<1x16x16xf32> -> vector<1x16x16xf32>
    "tpu.trace_stop"() : () -> ()
    %80 = vector.broadcast %19 : vector<1x1x16xf32> to vector<1x16x16xf32>
    %81 = arith.addf %79, %80 : vector<1x16x16xf32>
    %cst_32 = arith.constant dense<0xFF800000> : vector<1x16xf32>
    %82 = vector.multi_reduction <maximumf>, %81, %cst_32 [2] : vector<1x16x16xf32> to vector<1x16xf32>
    %83 = vector.shape_cast %82 : vector<1x16xf32> to vector<1x16x1xf32>
    %84 = vector.broadcast %83 : vector<1x16x1xf32> to vector<1x16x16xf32>
    %85 = arith.subf %81, %84 : vector<1x16x16xf32>
    %86 = math.exp %85 : vector<1x16x16xf32>
    %cst_33 = arith.constant dense<0.000000e+00> : vector<1x16xf32>
    %87 = vector.multi_reduction <add>, %86, %cst_33 [2] : vector<1x16x16xf32> to vector<1x16xf32>
    %88 = vector.shape_cast %87 : vector<1x16xf32> to vector<1x16x1xf32>
    %89 = tpu.reciprocal %88 {approx = true} : vector<1x16x1xf32> -> vector<1x16x1xf32>
    %90 = vector.broadcast %89 : vector<1x16x1xf32> to vector<1x16x16xf32>
    %91 = arith.mulf %86, %90 : vector<1x16x16xf32>
    %92 = arith.truncf %91 : vector<1x16x16xf32> to vector<1x16x16xbf16>
    %93 = vector.extract_strided_slice %18 {offsets = [0, 0, 24], sizes = [1, 16, 8], strides = [1, 1, 1]} : vector<1x16x32xbf16> to vector<1x16x8xbf16>
    "tpu.trace_start"() <{level = 10 : i32, message = "bqk,bkd->bqd"}> : () -> ()
    %cst_34 = arith.constant dense<0.000000e+00> : vector<1x16x8xf32>
    %94 = tpu.matmul %92, %93, %cst_34 {dimension_numbers = #tpu.dot_dimension_numbers<[2], [1], [1], [2], [0, 0, 0, 1, 1, 2], [0], [0]>} : vector<1x16x16xbf16>, vector<1x16x8xbf16>, vector<1x16x8xf32> -> vector<1x16x8xf32>
    "tpu.trace_stop"() : () -> ()
    %c0_35 = arith.constant 0 : index
    %c0_36 = arith.constant 0 : index
    %c24 = arith.constant 24 : index
    %95 = vector.load %arg14[%c0_35, %c0_36, %c24] : memref<1x16x32xf32, #tpu.memory_space<vmem>>, vector<1x16x8xf32>
    tpu.vector_store %arg14[%c0_35, %c0_36, %c24], %94 {strides = array<i32>} : memref<1x16x32xf32, #tpu.memory_space<vmem>>, vector<1x16x8xf32>,
    %c0_37 = arith.constant 0 : index
    %c0_38 = arith.constant 0 : index
    %c0_39 = arith.constant 0 : index
    %96 = vector.load %arg14[%c0_37, %c0_38, %c0_39] : memref<1x16x32xf32, #tpu.memory_space<vmem>>, vector<1x16x32xf32>
    %97 = vector.shape_cast %96 : vector<1x16x32xf32> to vector<16x32xf32>
    %98 = arith.truncf %97 : vector<16x32xf32> to vector<16x32xbf16>
    %c0_40 = arith.constant 0 : index
    %c0_41 = arith.constant 0 : index
    %c0_42 = arith.constant 0 : index
    %99 = vector.load %arg6[%c0_40, %c0_41, %c0_42] : memref<1x32x32xbf16, #tpu.memory_space<vmem>>, vector<1x32x32xbf16>
    %100 = vector.shape_cast %99 : vector<1x32x32xbf16> to vector<32x32xbf16>
    %cst_43 = arith.constant dense<0.000000e+00> : vector<16x32xf32>
    %101 = tpu.matmul %98, %100, %cst_43 {dimension_numbers = #tpu.dot_dimension_numbers<[1], [0], [0], [1], [0, 0, 1, 1], [], []>} : vector<16x32xbf16>, vector<32x32xbf16>, vector<16x32xf32> -> vector<16x32xf32>
    %c0_44 = arith.constant 0 : index
    %c0_45 = arith.constant 0 : index
    %c0_46 = arith.constant 0 : index
    %102 = vector.load %arg7[%c0_44, %c0_45, %c0_46] : memref<1x1x32xf32, #tpu.memory_space<vmem>>, vector<1x1x32xf32>
    %103 = vector.shape_cast %102 : vector<1x1x32xf32> to vector<1x32xf32>
    %104 = vector.broadcast %103 : vector<1x32xf32> to vector<16x32xf32>
    %105 = arith.addf %101, %104 : vector<16x32xf32>
    %106 = arith.truncf %105 : vector<16x32xf32> to vector<16x32xbf16>
    %c0_47 = arith.constant 0 : index
    %c0_48 = arith.constant 0 : index
    %c0_49 = arith.constant 0 : index
    %107 = vector.load %arg8[%c0_47, %c0_48, %c0_49] : memref<1x32x2048xbf16, #tpu.memory_space<vmem>>, vector<1x32x2048xbf16>
    %108 = vector.shape_cast %107 : vector<1x32x2048xbf16> to vector<32x2048xbf16>
    %cst_50 = arith.constant dense<0.000000e+00> : vector<16x2048xf32>
    %109 = tpu.matmul %106, %108, %cst_50 {dimension_numbers = #tpu.dot_dimension_numbers<[1], [0], [0], [1], [0, 0, 1, 1], [], []>} : vector<16x32xbf16>, vector<32x2048xbf16>, vector<16x2048xf32> -> vector<16x2048xf32>
    %c0_51 = arith.constant 0 : index
    %c0_52 = arith.constant 0 : index
    %c0_53 = arith.constant 0 : index
    %110 = vector.load %arg9[%c0_51, %c0_52, %c0_53] : memref<1x1x2048xf32, #tpu.memory_space<vmem>>, vector<1x1x2048xf32>
    %111 = vector.shape_cast %110 : vector<1x1x2048xf32> to vector<1x2048xf32>
    %112 = vector.broadcast %111 : vector<1x2048xf32> to vector<16x2048xf32>
    %113 = arith.addf %109, %112 : vector<16x2048xf32>
    %cst_54 = arith.constant 0.000000e+00 : f32
    %114 = vector.broadcast %cst_54 : f32 to vector<16x2048xf32>
    %115 = arith.maximumf %113, %114 : vector<16x2048xf32>
    %116 = arith.truncf %115 : vector<16x2048xf32> to vector<16x2048xbf16>
    %c0_55 = arith.constant 0 : index
    %c0_56 = arith.constant 0 : index
    %c0_57 = arith.constant 0 : index
    %117 = vector.load %arg10[%c0_55, %c0_56, %c0_57] : memref<1x2048x32xbf16, #tpu.memory_space<vmem>>, vector<1x2048x32xbf16>
    %118 = vector.shape_cast %117 : vector<1x2048x32xbf16> to vector<2048x32xbf16>
    %cst_58 = arith.constant dense<0.000000e+00> : vector<16x32xf32>
    %119 = tpu.matmul %116, %118, %cst_58 {dimension_numbers = #tpu.dot_dimension_numbers<[1], [0], [0], [1], [0, 0, 1, 1], [], []>} : vector<16x2048xbf16>, vector<2048x32xbf16>, vector<16x32xf32> -> vector<16x32xf32>
    %c0_59 = arith.constant 0 : index
    %c0_60 = arith.constant 0 : index
    %c0_61 = arith.constant 0 : index
    %120 = vector.load %arg11[%c0_59, %c0_60, %c0_61] : memref<1x1x32xf32, #tpu.memory_space<vmem>>, vector<1x1x32xf32>
    %121 = vector.shape_cast %120 : vector<1x1x32xf32> to vector<1x32xf32>
    %122 = vector.broadcast %121 : vector<1x32xf32> to vector<16x32xf32>
    %123 = arith.addf %119, %122 : vector<16x32xf32>
    %124 = vector.shape_cast %123 : vector<16x32xf32> to vector<1x16x32xf32>
    %125 = arith.truncf %124 : vector<1x16x32xf32> to vector<1x16x32xbf16>
    %c0_62 = arith.constant 0 : index
    %c0_63 = arith.constant 0 : index
    %c0_64 = arith.constant 0 : index
    %126 = vector.load %arg13[%c0_62, %c0_63, %c0_64] : memref<1x16x32xbf16, #tpu.memory_space<vmem>>, vector<1x16x32xbf16>
    tpu.vector_store %arg13[%c0_62, %c0_63, %c0_64], %125 {strides = array<i32>} : memref<1x16x32xbf16, #tpu.memory_space<vmem>>, vector<1x16x32xbf16>,
    %c1_i32 = arith.constant 1 : i32
    %127 = arith.cmpi eq, %arg1, %c1_i32 : i32
    %128 = arith.extui %127 : i1 to i32
    %c0_i32_65 = arith.constant 0 : i32
    %129 = arith.cmpi ne, %128, %c0_i32_65 : i32
    scf.if %129 {
      %c0_66 = arith.constant 0 : index
      %c0_67 = arith.constant 0 : index
      %c0_68 = arith.constant 0 : index
      %130 = vector.load %arg13[%c0_66, %c0_67, %c0_68] : memref<1x16x32xbf16, #tpu.memory_space<vmem>>, vector<1x1x32xbf16>
      %131 = arith.extf %130 : vector<1x1x32xbf16> to vector<1x1x32xf32>
      %c0_69 = arith.constant 0 : index
      %c0_70 = arith.constant 0 : index
      %c0_71 = arith.constant 0 : index
      %132 = vector.load %arg12[%c0_69, %c0_70, %c0_71] : memref<1x1x32xf32, #tpu.memory_space<vmem>>, vector<1x1x32xf32>
      tpu.vector_store %arg12[%c0_69, %c0_70, %c0_71], %131 {strides = array<i32>} : memref<1x1x32xf32, #tpu.memory_space<vmem>>, vector<1x1x32xf32>,
    } else {
    }
    return
  }
  func.func @transform_0(%arg0: i32, %arg1: i32) -> (i32, i32, i32) {
    %c0_i32 = arith.constant 0 : i32
    %c0_i32_0 = arith.constant 0 : i32
    %c0_i32_1 = arith.constant 0 : i32
    return %arg0, %c0_i32, %c0_i32_0 : i32, i32, i32
  }
  func.func @transform_1(%arg0: i32, %arg1: i32) -> (i32, i32, i32) {
    %c0_i32 = arith.constant 0 : i32
    %c0_i32_0 = arith.constant 0 : i32
    %c0_i32_1 = arith.constant 0 : i32
    return %arg0, %c0_i32, %c0_i32_0 : i32, i32, i32
  }
  func.func @transform_2(%arg0: i32, %arg1: i32) -> (i32, i32, i32) {
    %c0_i32 = arith.constant 0 : i32
    %c0_i32_0 = arith.constant 0 : i32
    %c0_i32_1 = arith.constant 0 : i32
    return %arg1, %c0_i32, %c0_i32_0 : i32, i32, i32
  }
  func.func @transform_3(%arg0: i32, %arg1: i32) -> (i32, i32, i32) {
    %c0_i32 = arith.constant 0 : i32
    %c0_i32_0 = arith.constant 0 : i32
    %c0_i32_1 = arith.constant 0 : i32
    return %arg1, %c0_i32, %c0_i32_0 : i32, i32, i32
  }
  func.func @transform_4(%arg0: i32, %arg1: i32) -> (i32, i32, i32) {
    %c0_i32 = arith.constant 0 : i32
    %c0_i32_0 = arith.constant 0 : i32
    %c0_i32_1 = arith.constant 0 : i32
    return %arg1, %c0_i32, %c0_i32_0 : i32, i32, i32
  }
  func.func @transform_5(%arg0: i32, %arg1: i32) -> (i32, i32, i32) {
    %c0_i32 = arith.constant 0 : i32
    %c0_i32_0 = arith.constant 0 : i32
    %c0_i32_1 = arith.constant 0 : i32
    return %arg1, %c0_i32, %c0_i32_0 : i32, i32, i32
  }
  func.func @transform_6(%arg0: i32, %arg1: i32) -> (i32, i32, i32) {
    %c0_i32 = arith.constant 0 : i32
    %c0_i32_0 = arith.constant 0 : i32
    %c0_i32_1 = arith.constant 0 : i32
    return %arg1, %c0_i32, %c0_i32_0 : i32, i32, i32
  }
  func.func @transform_7(%arg0: i32, %arg1: i32) -> (i32, i32, i32) {
    %c0_i32 = arith.constant 0 : i32
    %c0_i32_0 = arith.constant 0 : i32
    %c0_i32_1 = arith.constant 0 : i32
    return %arg1, %c0_i32, %c0_i32_0 : i32, i32, i32
  }
  func.func @transform_8(%arg0: i32, %arg1: i32) -> (i32, i32, i32) {
    %c0_i32 = arith.constant 0 : i32
    %c0_i32_0 = arith.constant 0 : i32
    %c0_i32_1 = arith.constant 0 : i32
    return %arg1, %c0_i32, %c0_i32_0 : i32, i32, i32
  }
  func.func @transform_9(%arg0: i32, %arg1: i32) -> (i32, i32, i32) {
    %c0_i32 = arith.constant 0 : i32
    %c0_i32_0 = arith.constant 0 : i32
    %c0_i32_1 = arith.constant 0 : i32
    return %arg1, %c0_i32, %c0_i32_0 : i32, i32, i32
  }
  func.func @transform_10(%arg0: i32, %arg1: i32) -> (i32, i32, i32) {
    %c0_i32 = arith.constant 0 : i32
    %c0_i32_0 = arith.constant 0 : i32
    %c0_i32_1 = arith.constant 0 : i32
    return %arg0, %c0_i32, %c0_i32_0 : i32, i32, i32
  }
}

</mosaic_0001>

<bundles_post_ra>
// kernel: transformer_encoder_forward.2
= control target key start
LH: loop header
LB: loop body
LE: loop exit
PB: predicated region body
PF: predicated region fallthrough
CT: control target
= control target key end

     0   :  { %s431_s18 = smov 0   ;;  %s468_s0 = inlined_call_operand.vmem [shape: f32[2,8,6], index: 0, kind: input, shape index: {}]   ;;  %s469_s1 = inlined_call_operand.vmem [shape: bf16[6,32], index: 1, kind: input, shape index: {}]   ;;  %s470_s2 = inlined_call_operand.vmem [shape: f32[1,32], index: 2, kind: input, shape index: {}]   ;;  %s471_s3 = inlined_call_operand.vmem [shape: f32[1,32], index: 3, kind: input, shape index: {}]   ;;  %s472_s4 = inlined_call_operand.vmem [shape: bf16[2,16,32], index: 4, kind: output, shape index: {0}]   ;;  %s473_s5 = inlined_call_operand.vmem [shape: f32[2,1,16], index: 5, kind: output, shape index: {1}]  }
   0x1 LB: > { %s370_s19 = sadd.s32 4294967295, %s398_s18   ;;  %p374_p0 = scmp.ge.s32.totalorder %s398_s18, 1  ;;  %s398_s18 = sphi %s431_s18, %s16_s18  }
   0x2   : > { %p189_p1 = scmp.lt.s32.totalorder %s398_s18, 3 }
   0x4   : > { %p190_p2 = pnand %p374_p0, %p189_p1 }
   0x5   : > { %p219_p3 = scmp.lt.s32.totalorder (!%p190_p2), %s370_s19, 1 }
   0x6   : > { %193 = sbr.rel (%p190_p2) target bundleno = 152 (0x98), region = 36 }
   0xb   : > { %v234_v0 = vld [vmem:[%s469_s1] sm:$0x7]  ;;  %vm243_vm0 = vcmask 1042432   ;;  %s475_s19 = smov (!%p219_p3, %s370_s19), 1  ;;  %vm239_vm1 = vcmask 48128   ;;  %v279_v6 = vlaneseq  ;;  %v400_v10 = vmov 0.0  }
   0xc   : > { %v245_v1 = vsel %vm243_vm0, %v234_v0, 0  ;;  %s375_s22 = sshll.u32 %s475_s19, 3  ;;  %vm284_vm3 = vcmask 7168   ;;  %vm286_vm4 = vcmask 72704   ;;  %s230_s28 = scalar_lea.vmem %s473_s5, %s475_s19  ;;  %vm288_vm5 = vcmask 122880  }
   0xd   : > { %254 = vmatpush.bf16.msra.mxu0 %v245_v1  ;;  %s222_s25 = scalar_lea.vmem %s468_s0, %s375_s22  ;;  %v280_v7 = vand.u32 127, %v279_v6  ;;  %v391_v14 = vld [vmem:[%s470_s2] ss:$0 sm:$0xff]  ;;  %vm264_vm6 = vcmask 1040384   ;;  %s227_s10 = scalar_lea.vmem %s472_s4, %s375_s22  ;;  %vm269_vm7 = vcmask 257024  }
   0xe   : > { %v232_v2 = vld [vmem:[%s222_s25] sm:$0xff] }
   0xf   : > { %v233_v3 = vpack.c.bf16 %v232_v2, %v232_v2  ;;  %v272_v4 = vand.u32 2147483647, %v232_v2  ;;  %v281_v8 = vadd.s32 4294967295, %v280_v7  ;;  %v260_v18 = vld [vmem:[%s471_s3] sm:$0x1] }
  0x11   : > { %378 = vmatmul.msk.bf16.vlgmr.msra.gmra.mxu0 %vm239_vm1, %v233_v3  ;;  %v273_v5 = vsel %vm239_vm1, %v272_v4, 0.0 }
  0x12   : > { %274 = vadd.xlane.f32.xlu0 %v273_v5 }
  0x85   : > { %v275_v9 = vpop.xlane.xlu0 %274 }
  0x86   : > { %vm276_vm2 = vcmp.ne.f32.partialorder %v275_v9, 0.0 }
  0x87   : > { %v277_v11 = vsel %vm276_vm2, -1e+30, %v400_v10 }
  0x88   : > { %v282_v12 = vperm.slane %v277_v11, %v281_v8 }
  0x8a   : > { %v285_v13 = vsel %vm284_vm3, 0.0, %v282_v12 }
  0x8b   : > { %v287_v15 = vsel %vm286_vm4, %v285_v13, -1e+30 }
  0x8c   : > { %289 = vst.msk [vmem:[%s230_s28] sm:$0x1] %vm288_vm5, %v287_v15 }
  0x8e   : > { %v256_v16 = vpop.f32.mrf.mxu0 }
  0x8f   : > { %v257_v17 = vadd.f32 %v391_v14, %v256_v16 }
  0x91   : > { %v262_v19 = vrot.slane %v257_v17, 7 }
  0x93   : > { %v265_v20 = vsel %vm264_vm6, %v260_v18, %v262_v19  ;;  %v266_v21 = vsel %vm264_vm6, %v262_v19, 0.0 }
  0x94   : > { %v267_v22 = vpack.c.bf16 %v265_v20, %v265_v20  ;;  %v268_v23 = vpack.c.bf16 %v266_v21, %v266_v21 }
  0x96   : > { %270 = vst.msk [vmem:[%s227_s10] sm:$0xf] %vm269_vm7, %v267_v22  ;;  %v258_v24 = vpop.f32.mrf.mxu0 }
  0x97   : > { %271 = vst.msk [vmem:[%s227_s10 + $0x4] sm:$0xf] %vm269_vm7, %v268_v23 }
  0x98 PF: > { %s16_s18 = sadd.s32 1, %s398_s18  }
  0x99   : > { %p13_p4 = scmp.ge.s32.totalorder %s16_s18, 4  }
  0x9b   :  { %15 = sbr.rel (!%p13_p4) target bundleno = 1 (0x1), region = 78 }

// kernel: transformer_encoder_forward.3
= control target key start
LH: loop header
LB: loop body
LE: loop exit
PB: predicated region body
PF: predicated region fallthrough
CT: control target
= control target key end

     0   :  { %s4560_s0 = inlined_call_operand.vmem [shape: bf16[2,16,32], index: 0, kind: input, shape index: {}]   ;;  %s4561_s1 = inlined_call_operand.vmem [shape: f32[2,1,16], index: 1, kind: input, shape index: {}]   ;;  %s4562_s2 = inlined_call_operand.vmem [shape: bf16[2,32,96], index: 2, kind: input, shape index: {}]   ;;  %s4563_s3 = inlined_call_operand.vmem [shape: f32[2,1,96], index: 3, kind: input, shape index: {}]   ;;  %s4564_s4 = inlined_call_operand.vmem [shape: bf16[2,32,32], index: 4, kind: input, shape index: {}]   ;;  %s4565_s5 = inlined_call_operand.vmem [shape: f32[2,1,32], index: 5, kind: input, shape index: {}]   ;;  %s4566_s6 = inlined_call_operand.vmem [shape: bf16[2,32,2048], index: 6, kind: input, shape index: {}]   ;;  %s4567_s7 = inlined_call_operand.vmem [shape: f32[2,1,2048], index: 7, kind: input, shape index: {}]   ;;  %s4568_s8 = inlined_call_operand.vmem [shape: bf16[2,2048,32], index: 8, kind: input, shape index: {}]   ;;  %s4569_s9 = inlined_call_operand.vmem [shape: f32[2,1,32], index: 9, kind: input, shape index: {}]   ;;  %s4570_s10 = inlined_call_operand.hbm [shape: f32[2,1,32], index: 10, kind: output, shape index: {}]  }
   0x1   :  { %4583 = sst [smem:[#allocation18_spill]] %s4560_s0 }
   0x2   :  { %4584 = sst [smem:[#allocation19_spill]] %s4562_s2 }
   0x3   :  { %4585 = sst [smem:[#allocation20_spill]] %s4563_s3 }
   0x4   :  { %4586 = sst [smem:[#allocation21_spill]] %s4564_s4 }
   0x5   :  { %4587 = sst [smem:[#allocation22_spill]] %s4570_s10 }
   0x6   :  { %15 = vsyncpa [#allocation5], 0 }
   0x7   :  { %17 = vsyncpa [#allocation5 + $0x1], 0  ;;  %s4061_s13 = smov 0   ;;  %s4063_s14 = smov 0  }
   0x8   :  { %s4065_s15 = smov 0   ;;  %s4067_s16 = smov 0  }
   0x9   :  { %s4069_s17 = smov 0   ;;  %s4071_s18 = smov 0  }
   0xa   :  { %s4073_s19 = smov 0   ;;  %s4075_s20 = smov 0  }
   0xb LB: > { %4588 = sst [smem:[#allocation7_spill]] %s3962_s13  ;;  %s2899_s21 = sadd.s32 4294967295, %s3990_s20   ;;  %s3990_s20 = sphi %s4075_s20, %s23_s20   ;;  %s3986_s19 = sphi %s4073_s19, %s4621_s19   ;;  %s3982_s18 = sphi %s4071_s18, %s4620_s18   ;;  %s3978_s17 = sphi %s4069_s17, %s4619_s17   ;;  %s3974_s16 = sphi %s4067_s16, %s4618_s16   ;;  %s3970_s15 = sphi %s4065_s15, %s4617_s15   ;;  %s3966_s14 = sphi %s4063_s14, %s4623_s14   ;;  %s3962_s13 = sphi %s4061_s13, %s4622_s13  }
   0xc   : > { %4589 = sst [smem:[#allocation8_spill]] %s3970_s15  ;;  %s2900_s22 = sadd.s32 4294967294, %s3990_s20  }
   0xd   : > { %4590 = sst [smem:[#allocation9_spill]] %s3978_s17  ;;  %s32_s23 = sadd.s32 1, %s3982_s18 }
   0xe   : > { %4591 = sst [smem:[#allocation10_spill]] %s3982_s18  ;;  %p33_p0 = scmp.ge.s32.totalorder %s32_s23, 2 }
   0xf   : > { %4592 = sst [smem:[#allocation11_spill]] %s3986_s19  ;;  %s35_s24 = sadd.s32 1, %s3986_s19 }
  0x10   : > { %4593 = sst [smem:[#allocation12_spill]] %s3990_s20  ;;  %p312_p1 = scmp.ne.s32.totalorder %s3970_s15, %s3966_s14 }
  0x11   : > { %p313_p2 = scmp.eq.s32.totalorder %s2899_s21, 3  ;;  %s4625_s23 = smov (%p33_p0, %s32_s23), 0 }
  0x12   : > { %4594 = sst [smem:[#allocation13_spill]] %s4625_s23  ;;  %s4627_s24 = smov (!%p33_p0, %s35_s24), %s3986_s19 }
  0x13   : > { %p4110_p3 = por %p313_p2, %p312_p1  ;;  %p318_p4 = scmp.ne.s32.totalorder %s3966_s14, %s3962_s13 }
  0x14   : > { %p37_p5 = scmp.ge.s32.totalorder %s4627_s24, 2  ;;  %p319_p6 = scmp.eq.s32.totalorder %s2900_s22, 3 }
  0x15   : > { %s4595_s25 = scalar_select %p4110_p3, 1, 0 }
  0x16   : > { %p2903_p7 = scmp.ge.s32.totalorder %s3990_s20, 1  ;;  %p408_p8 = scmp.lt.s32.totalorder %s3990_s20, 5 }
  0x17   : > { %4596 = sst [smem:[#allocation14_spill]] %s4595_s25  ;;  %s4629_s24 = smov (%p37_p5, %s4627_s24), 0 }
  0x18   : > { %4597 = sst [smem:[#allocation15_spill]] %s4629_s24  ;;  %p4120_p9 = por %p319_p6, %p318_p4 }
  0x19   : > { %p409_p10 = pnand %p2903_p7, %p408_p8  ;;  %s299_s27 = ssub.s32 %s3986_s19, %s4629_s24 }
  0x1a   : > { %s4598_s26 = scalar_select %p4120_p9, 1, 0 }
  0x1b   : > { %s302_s28 = sadd.s32 1, %s3970_s15  ;;  %p300_p11 = scmp.eq.s32.totalorder %s299_s27, 0 }
  0x1c   : > { %4599 = sst [smem:[#allocation16_spill]] %s4598_s26  ;;  %412 = sbr.rel (%p409_p10) target bundleno = 1539 (0x603), region = 60 }
  0x1d   : > { %s4128_s29 = scalar_select %p300_p11, %s3970_s15, %s302_s28  }
  0x1e   : > { %p481_p12 = scmp.lt.s32.totalorder (!%p409_p10), %s3978_s17, 1  ;;  %p489_p13 = scmp.lt.s32.totalorder (!%p409_p10), %s3974_s16, 1 }
  0x1f   : > { %4600 = sst [smem:[#allocation17_spill]] %s4128_s29  ;;  %s4605_s28 = sand.u32 (!%p409_p10), 1, %s3966_s14  }
  0x20   : > { %s4601_s0 = sld [smem:[#allocation18_spill]] (!%p409_p10)  ;;  %p2915_p0 = scmp.ne.s32.totalorder (!%p409_p10), %s3974_s16, 0 }
  0x21   : > { %s4134_s11 = scalar_select %p481_p12, %s3978_s17, 1 }
  0x22   : > { %s4137_s12 = scalar_select %p489_p13, %s3974_s16, 1 }
  0x23   : > { %s3605_s21 = sshll.u32 %s4134_s11, 3  ;;  %s4602_s2 = sld [smem:[#allocation19_spill]] }
  0x24   : > { %s3606_s19 = sshll.u32 %s4137_s12, 4  ;;  %s4603_s3 = sld [smem:[#allocation20_spill]] }
  0x25   : > { %s4604_s4 = sld [smem:[#allocation21_spill]]  ;;  %s3608_s24 = sshll.u32 %s4137_s12, 8 }
  0x26   : > { %s485_s23 = scalar_lea.vmem %s4601_s0, %s3605_s21  ;;  %s4168_s0 = scalar_lea.vmem %s4567_s7, %s3606_s19 }
  0x27   : > { %s4173_s13 = scalar_lea.vmem %s4566_s6, %s3608_s24  ;;  %s3609_s26 = sshll.u32 %s4137_s12, 10 }
  0x28   : > { %s4179_s25 = scalar_lea.vmem %s4568_s8, %s3609_s26  ;;  %s521_s27 = scalar_lea.vmem %s4569_s9, %s4137_s12 }
  0x29   : > { %s493_s15 = scalar_lea.vmem %s4602_s2, %s3606_s19  ;;  %526 = sbr.rel (%p2915_p0) target bundleno = 49 (0x31), region = 64 }
  0x2a   : > { %s496_s20 = scalar_lea.vmem %s4603_s3, %s4137_s12 }
  0x2b   : > { %s4158_s17 = scalar_lea.vmem %s4604_s4, %s3606_s19  ;;  %s4187_s4 = scalar_lea.vmem [#allocation4], %s4605_s28 }
  0x2e   : > { %v527_v0 = vld [vmem:[%s485_s23] sm:$0xf]  ;;  %vm529_vm0 = vcmask 257024   ;;  %v528_v1 = vld [vmem:[%s485_s23 + $0x4] sm:$0xf] }
  0x2f   : > { %530 = vst.msk [vmem:[#allocation2] sm:$0xf] %vm529_vm0, %v527_v0 }
  0x30   : > { %531 = vst.msk [vmem:[#allocation2 + $0x4] sm:$0xf] %vm529_vm0, %v528_v1 }
  0x31 PF: > { %v3612_v2 = vld [vmem:[%s493_s15 + $0x8] sm:$0xff]  ;;  %v3611_v3 = vld [vmem:[%s493_s15] sm:$0xff]  ;;  %vm559_vm1 = vcmask 261120   ;;  %s3992_s2 = smov 104   ;;  %s3993_s3 = smov 120   ;;  %vm590_vm2 = vcmask 64512  }
  0x32   : > { %569 = vmatpush.bf16.msra.mxu0 %v3612_v2  ;;  %v3860_v6 = vld [vmem:[%s496_s20] ss:$0 sm:$0xff]  ;;  %s3994_s15 = smov 96   ;;  %s3995_s19 = smov 80   ;;  %vm611_vm3 = vcmask 130048   ;;  %vm744_vm4 = vcmask 130112  }
  0x33   : > { %s3996_s20 = smov 72   ;;  %s3997_s23 = smov 88   ;;  %vm828_vm5 = vcmask 195712   ;;  %vm912_vm6 = vcmask 261312   ;;  %vm2713_vm7 = vcmask 257024  }
  0x34   : > { %s3998_s28 = smov 112   ;;  %s4606_s21 = scalar_lea.vmem %s4561_s1, %s4134_s11 }
  0x35   : > { %v3861_v26 = vld [vmem:[%s4606_s21] ss:$0 sm:$0xff]  ;;  %s3999_s11 = smov 64   ;;  %s4000_s18 = smov 56  }
  0x36   : > { %570 = vmatpush.bf16.msra.mxu0 %v3611_v3  ;;  %s4001_s29 = smov 40   ;;  %s4002_s26 = smov 48  }
  0x37   : > { %v3610_v4 = vld [vmem:[#allocation2] sm:$0xff]  ;;  %s4003_s10 = smov 8   ;;  %s4004_s22 = smov 24  }
  0x38   : > { %p3602_p1 = scmp.ne.s32.totalorder %s3974_s16, 1 }
  0x39   : > { %2928 = vmatmul.msk.bf16.vlgmr.msra.gmra.mxu0 %vm559_vm1, %v3610_v4 }
  0xb6   : > { %v572_v5 = vpop.f32.mrf.mxu0 }
  0xb7   : > { %v573_v7 = vadd.f32 %v3860_v6, %v572_v5 }
  0xb9   : > { %v577_v9 = vpack.c.bf16 %v573_v7, %v573_v7 }
  0xbb   : > { %v585_v12 = vunpack.c.l.b16 %v577_v9 }
  0xbe   : > { %v574_v8 = vpop.f32.mrf.mxu0 }
  0xbf   : > { %v575_v10 = vadd.f32 %v3860_v6, %v574_v8 }
  0xc1   : > { %v578_v11 = vpack.c.bf16 %v575_v10, %v575_v10 }
  0xc3   : > { %v586_v13 = vunpack.c.l.b16 %v578_v11 }
  0xc5   : > { %v4191_v14 = vpack.c.b16 %v586_v13, %v585_v12 }
  0xc7   : > { %831 = vrot.lane.b32.xlu2 %v4191_v14, %s3992_s2  ;;  %663 = vrot.lane.b32.xlu1 %v4191_v14, %s3993_s3  ;;  %s4005_s2 = smov 16  }
  0xc8   : > { %588 = vrot.lane.b32.xlu0 %v4191_v14, %s3994_s15  ;;  %s4607_s15 = scalar_lea.vmem %s4565_s5, %s4137_s12 }
  0xcf   : > { %749 = vrot.lane.b32.xlu2 %v4191_v14, %s3995_s19  ;;  %833 = vrot.lane.b32.xlu1 %v4191_v14, %s3996_s20 }
  0xd0   : > { %665 = vrot.lane.b32.xlu0 %v4191_v14, %s3997_s23 }
  0xd8   : > { %747 = vrot.lane.b32.xlu0 %v4191_v14, %s3998_s28 }
 0x121   : > { %v832_v15 = vpop.permute.xlu2 %831 }
 0x129   : > { %v750_v16 = vpop.permute.xlu2 %749 }
 0x12a   : > { %v755_v17 = vsel %vm590_vm2, %v750_v16, 0 }
 0x12b   : > { %764 = vmatpush.bf16.xpose.msrb.mxu0 %v755_v17 }
 0x139   : > { %v664_v18 = vpop.permute.xlu1 %663 }
 0x13a   : > { %v589_v19 = vpop.permute.xlu0 %588 }
 0x13b   : > { %v595_v20 = vsel %vm590_vm2, %v589_v19, 0 }
 0x13c   : > { %604 = vmatpush.bf16.xpose.msra.mxu1 %v595_v20 }
 0x141   : > { %v834_v21 = vpop.permute.xlu1 %833 }
 0x142   : > { %v666_v22 = vpop.permute.xlu0 %665  ;;  %v839_v23 = vsel %vm590_vm2, %v834_v21, 0 }
 0x143   : > { %2929 = vmatmul.msk.bf16.vlgmr.msra.gmra.mxu1 %vm590_vm2, %v4191_v14  ;;  %v671_v24 = vsel %vm590_vm2, %v666_v22, 0 }
 0x144   : > { %680 = vmatpush.bf16.xpose.msra.mxu3 %v671_v24 }
 0x14a   : > { %v748_v25 = vpop.permute.xlu0 %747 }
 0x14b   : > { %2931 = vmatmul.msk.bf16.vlgmr.msra.gmra.mxu3 %vm590_vm2, %v664_v18  ;;  %2933 = vmatmul.msk.bf16.vlgmr.msrb.gmra.mxu0 %vm590_vm2, %v748_v25 }
 0x14c   : > { %848 = vmatpush.bf16.xpose.msrb.mxu3 %v839_v23 }
 0x15b   : > { %2935 = vmatmul.msk.bf16.vlgmr.msrb.gmra.mxu3 %vm590_vm2, %v832_v15 }
 0x1c0   : > { %v606_v27 = vpop.f32.mrf.mxu1 }
 0x1c1   : > { %v607_v28 = vadd.f32 %v3861_v26, %v606_v27 }
 0x1c3   : > { %v612_v29 = vsel %vm611_vm3, %v607_v28, -inf }
 0x1c4   : > { %613 = vmax.xlane.f32.xlu1 %v612_v29 }
 0x1c8   : > { %v608_v30 = vpop.f32.mrf.mxu1  ;;  %v766_v31 = vpop.f32.mrf.mxu0 }
 0x1c9   : > { %v609_v32 = vadd.f32 %v3861_v26, %v608_v30  ;;  %v767_v40 = vadd.f32 %v3861_v26, %v766_v31 }
 0x1cb   : > { %v615_v33 = vsel %vm611_vm3, %v609_v32, -inf  ;;  %v771_v44 = vsel %vm611_vm3, %v767_v40, -inf }
 0x1cc   : > { %616 = vmax.xlane.f32.xlu2 %v615_v33 }
 0x1ce   : > { %v682_v34 = vpop.f32.mrf.mxu3 }
 0x1cf   : > { %v683_v35 = vadd.f32 %v3861_v26, %v682_v34 }
 0x1d0   : > { %v768_v36 = vpop.f32.mrf.mxu0 }
 0x1d1   : > { %v769_v37 = vadd.f32 %v3861_v26, %v768_v36  ;;  %v687_v38 = vsel %vm611_vm3, %v683_v35, -inf }
 0x1d2   : > { %688 = vmax.xlane.f32.xlu0 %v687_v38 }
 0x1d3   : > { %v774_v39 = vsel %vm611_vm3, %v769_v37, -inf }
 0x1d4   : > { %775 = vmax.xlane.f32.xlu1 %v774_v39 }
 0x1d6   : > { %v684_v41 = vpop.f32.mrf.mxu3 }
 0x1d7   : > { %v685_v42 = vadd.f32 %v3861_v26, %v684_v41 }
 0x1d9   : > { %v690_v43 = vsel %vm611_vm3, %v685_v42, -inf }
 0x1da   : > { %691 = vmax.xlane.f32.xlu2 %v690_v43  ;;  %772 = vmax.xlane.f32.xlu0 %v771_v44 }
 0x1de   : > { %v850_v45 = vpop.f32.mrf.mxu3 }
 0x1df   : > { %v851_v46 = vadd.f32 %v3861_v26, %v850_v45 }
 0x1e1   : > { %v855_v47 = vsel %vm611_vm3, %v851_v46, -inf }
 0x1e2   : > { %856 = vmax.xlane.f32.xlu1 %v855_v47 }
 0x1e6   : > { %v852_v48 = vpop.f32.mrf.mxu3 }
 0x1e7   : > { %v853_v49 = vadd.f32 %v3861_v26, %v852_v48 }
 0x1e9   : > { %v858_v50 = vsel %vm611_vm3, %v853_v49, -inf }
 0x1ea   : > { %859 = vmax.xlane.f32.xlu2 %v858_v50 }
 0x1fb   : > { %641 = vrot.lane.b32.xlu1 %v4191_v14, %s3999_s11 }
 0x202   : > { %716 = vrot.lane.b32.xlu2 %v4191_v14, %s4000_s18 }
 0x237   : > { %v614_v51 = vpop.xlane.xlu1 %613 }
 0x238   : > { %v618_v52 = vsub.f32 %v607_v28, %v614_v51 }
 0x23a   : > { %v620_v53 = vmul.f32 1.442695, %v618_v52 }
 0x23c   : > { %3864 = vpow2.f32 %v620_v53 }
 0x23f   : > { %v617_v54 = vpop.xlane.xlu2 %616 }
 0x240   : > { %v619_v55 = vsub.f32 %v609_v32, %v617_v54 }
 0x242   : > { %v4224_v56 = vpop.eup %3864  ;;  %v622_v57 = vmul.f32 1.442695, %v619_v55 }
 0x243   : > { %v624_v58 = vsel %vm611_vm3, %v4224_v56, 0.0 }
 0x244   : > { %3866 = vpow2.f32 %v622_v57  ;;  %625 = vadd.xlane.f32.xlu2 %v624_v58 }
 0x245   : > { %v689_v59 = vpop.xlane.xlu0 %688 }
 0x246   : > { %v693_v60 = vsub.f32 %v683_v35, %v689_v59 }
 0x247   : > { %v776_v61 = vpop.xlane.xlu1 %775 }
 0x248   : > { %v695_v62 = vmul.f32 1.442695, %v693_v60  ;;  %v778_v63 = vsub.f32 %v769_v37, %v776_v61 }
 0x24a   : > { %v3867_v0 = vpop.eup %3866  ;;  %3868 = vpow2.f32 %v695_v62  ;;  %v781_v1 = vmul.f32 1.442695, %v778_v63 }
 0x24b   : > { %v627_v2 = vsel %vm611_vm3, %v3867_v0, 0.0 }
 0x24c   : > { %3870 = vpow2.f32 %v781_v1  ;;  %628 = vadd.xlane.f32.xlu0 %v627_v2 }
 0x24d   : > { %v692_v3 = vpop.xlane.xlu2 %691  ;;  %v773_v4 = vpop.xlane.xlu0 %772 }
 0x24e   : > { %v694_v5 = vsub.f32 %v685_v42, %v692_v3  ;;  %v777_v6 = vsub.f32 %v767_v40, %v773_v4 }
 0x250   : > { %v3869_v7 = vpop.eup %3868  ;;  %v697_v8 = vmul.f32 1.442695, %v694_v5  ;;  %v779_v9 = vmul.f32 1.442695, %v777_v6 }
 0x251   : > { %v699_v10 = vsel %vm611_vm3, %v3869_v7, 0.0 }
 0x252   : > { %v4230_v11 = vpop.eup %3870  ;;  %3872 = vpow2.f32 %v697_v8  ;;  %700 = vadd.xlane.f32.xlu2 %v699_v10 }
 0x253   : > { %3874 = vpow2.f32 %v779_v9  ;;  %v786_v12 = vsel %vm611_vm3, %v4230_v11, 0.0 }
 0x254   : > { %787 = vadd.xlane.f32.xlu0 %v786_v12 }
 0x255   : > { %v857_v13 = vpop.xlane.xlu1 %856 }
 0x256   : > { %v861_v15 = vsub.f32 %v851_v46, %v857_v13 }
 0x258   : > { %v3873_v16 = vpop.eup %3872  ;;  %v863_v17 = vmul.f32 1.442695, %v861_v15 }
 0x259   : > { %v4234_v18 = vpop.eup %3874  ;;  %v702_v20 = vsel %vm611_vm3, %v3873_v16, 0.0 }
 0x25a   : > { %3876 = vpow2.f32 %v863_v17  ;;  %v783_v19 = vsel %vm611_vm3, %v4234_v18, 0.0 }
 0x25b   : > { %784 = vadd.xlane.f32.xlu1 %v783_v19 }
 0x25c   : > { %703 = vadd.xlane.f32.xlu0 %v702_v20 }
 0x25d   : > { %v860_v21 = vpop.xlane.xlu2 %859 }
 0x25e   : > { %v862_v22 = vsub.f32 %v853_v49, %v860_v21 }
 0x260   : > { %v3877_v23 = vpop.eup %3876  ;;  %v865_v24 = vmul.f32 1.442695, %v862_v22  ;;  %v3614_v22 = vld [vmem:[%s4158_s17 + $0x8] sm:$0xff] }
 0x261   : > { %v867_v25 = vsel %vm611_vm3, %v3877_v23, 0.0  ;;  %947 = vmatpush.bf16.msra.mxu0 %v3614_v22  ;;  %v3052_v22 = vld [vmem:[%s4173_s13 + $0xa8] sm:$0xf] }
 0x262   : > { %3878 = vpow2.f32 %v865_v24 }
 0x264   : > { %868 = vadd.xlane.f32.xlu0 %v867_v25 }
 0x265   : > { %v717_v29 = vpop.permute.xlu2 %716 }
 0x268   : > { %v3879_v26 = vpop.eup %3878 }
 0x269   : > { %v870_v27 = vsel %vm611_vm3, %v3879_v26, 0.0 }
 0x26a   : > { %884 = vrot.lane.b32.xlu2 %v4191_v14, %s4001_s29 }
 0x26c   : > { %871 = vadd.xlane.f32.xlu0 %v870_v27 }
 0x26d   : > { %v642_v28 = vpop.permute.xlu1 %641 }
 0x26e   : > { %654 = vmatpush.bf16.msra.mxu2 %v642_v28 }
 0x272   : > { %729 = vmatpush.bf16.msrb.mxu2 %v717_v29 }
 0x280   : > { %800 = vrot.lane.b32.xlu0 %v4191_v14, %s4002_s26 }
 0x2b7   : > { %v626_v30 = vpop.xlane.xlu2 %625 }
 0x2b8   : > { %3880 = vrcp.f32 %v626_v30 }
 0x2be   : > { %v3881_v32 = vpop.eup %3880 }
 0x2bf   : > { %v629_v31 = vpop.xlane.xlu0 %628  ;;  %v632_v33 = vmul.f32 %v3881_v32, %v4224_v56  ;;  %v3639_v32 = vld [vmem:[%s4173_s13 + $0xbc] sm:$0xf0] }
 0x2c0   : > { %3882 = vrcp.f32 %v629_v31  ;;  %v3012_v31 = vld [vmem:[%s4173_s13 + $0x80] sm:$0xf] }
 0x2c1   : > { %v634_v38 = vpack.c.bf16 %v632_v33, %v632_v33  ;;  %v3631_v33 = vld [vmem:[%s4173_s13 + $0x84] sm:$0xf] }
 0x2c3   : > { %v638_v40 = vunpack.c.l.b16 %v634_v38 }
 0x2c5   : > { %v701_v34 = vpop.xlane.xlu2 %700 }
 0x2c6   : > { %v3883_v35 = vpop.eup %3882  ;;  %3884 = vrcp.f32 %v701_v34  ;;  %v3013_v34 = vor.u32 %v3639_v32, %v3012_v31  ;;  %v2980_v31 = vld [vmem:[%s4173_s13 + $0x20] sm:$0xf] }
 0x2c7   : > { %v788_v36 = vpop.xlane.xlu0 %787  ;;  %v633_v37 = vmul.f32 %v3883_v35, %v3867_v0  ;;  %v3014_v35 = vld [vmem:[%s4173_s13 + $0xc0] sm:$0xf0]  ;;  %v3627_v32 = vld [vmem:[%s4173_s13 + $0x5c] sm:$0xf0] }
 0x2c8   : > { %v3017_v38 = vor.u32 %v3631_v33, %v3014_v35  ;;  %v3619_v35 = vld [vmem:[%s4173_s13 + $0x24] sm:$0xf] }
 0x2c9   : > { %v635_v39 = vpack.c.bf16 %v633_v37, %v633_v37  ;;  %v3640_v37 = vld [vmem:[%s4173_s13 + $0xc4] sm:$0xf0] }
 0x2ca   : > { %1207 = vmatpush.bf16.msra.mxu3 %v3017_v38  ;;  %v3628_v38 = vld [vmem:[%s4173_s13 + $0x64] sm:$0xf0] }
 0x2cb   : > { %v639_v41 = vunpack.c.l.b16 %v635_v39 }
 0x2cc   : > { %v3885_v44 = vpop.eup %3884 }
 0x2cd   : > { %v885_v42 = vpop.permute.xlu2 %884  ;;  %v640_v43 = vpack.c.b16 %v639_v41, %v638_v40  ;;  %v707_v45 = vmul.f32 %v3885_v44, %v3869_v7  ;;  %v3632_v40 = vld [vmem:[%s4173_s13 + $0x8c] sm:$0xf]  ;;  %v3615_v44 = vld [vmem:[%s4173_s13 + $0x4] sm:$0xf] }
 0x2ce   : > { %v785_v53 = vpop.xlane.xlu1 %784  ;;  %v3022_v41 = vld [vmem:[%s4173_s13 + $0xc8] sm:$0xf0] }
 0x2cf   : > { %2930 = vmatmul.msk.bf16.vlgmr.msra.gmra.mxu2 %vm611_vm3, %v640_v43  ;;  %v704_v14 = vpop.xlane.xlu0 %703  ;;  %v709_v47 = vpack.c.bf16 %v707_v45, %v707_v45  ;;  %v2948_v43 = vld [vmem:[%s4173_s13] sm:$0xf] }
 0x2d0   : > { %897 = vmatpush.bf16.msra.mxu2 %v885_v42  ;;  %3886 = vrcp.f32 %v704_v14  ;;  %v3025_v42 = vor.u32 %v3632_v40, %v3022_v41  ;;  %v3623_v14 = vld [vmem:[%s4173_s13 + $0x3c] sm:$0xf0]  ;;  %v2990_v40 = vld [vmem:[%s4173_s13 + $0x68] sm:$0xf0]  ;;  %v2981_v41 = vor.u32 %v3627_v32, %v2980_v31 }
 0x2d1   : > { %v713_v51 = vunpack.c.l.b16 %v709_v47  ;;  %v2949_v45 = vor.u32 %v3623_v14, %v2948_v43  ;;  %v2956_v47 = vld [vmem:[%s4173_s13 + $0x8] sm:$0xf] }
 0x2d2   : > { %v3656_v31 = vld [vmem:[%s4179_s25 + $0x48] sm:$0xff] }
 0x2d3   : > { %v3664_v32 = vld [vmem:[%s4179_s25 + $0x88] sm:$0xff] }
 0x2d6   : > { %v3887_v46 = vpop.eup %3886 }
 0x2d7   : > { %v708_v48 = vmul.f32 %v3887_v46, %v3873_v16  ;;  %v869_v49 = vpop.xlane.xlu0 %868  ;;  %v2950_v46 = vld [vmem:[%s4173_s13 + $0x40] sm:$0xf0] }
 0x2d8   : > { %3888 = vrcp.f32 %v869_v49  ;;  %v2953_v49 = vor.u32 %v3615_v44, %v2950_v46  ;;  %v3060_v44 = vld [vmem:[%s4173_s13 + $0xb0] sm:$0xf]  ;;  %v3637_v46 = vld [vmem:[%s4173_s13 + $0xb4] sm:$0xf] }
 0x2d9   : > { %v710_v50 = vpack.c.bf16 %v708_v48, %v708_v48  ;;  %3890 = vrcp.f32 %v785_v53  ;;  %v3624_v48 = vld [vmem:[%s4173_s13 + $0x44] sm:$0xf0] }
 0x2da   : > { %1208 = vmatpush.bf16.msra.mxu3 %v2953_v49  ;;  %v3646_v49 = vld [vmem:[%s4173_s13 + $0xf4] sm:$0xf0] }
 0x2db   : > { %v714_v52 = vunpack.c.l.b16 %v710_v50  ;;  %v2957_v50 = vor.u32 %v3624_v48, %v2956_v47  ;;  %v3062_v47 = vld [vmem:[%s4173_s13 + $0xf0] sm:$0xf0]  ;;  %v3068_v48 = vld [vmem:[%s4173_s13 + $0xb8] sm:$0xf] }
 0x2dd   : > { %v715_v54 = vpack.c.b16 %v714_v52, %v713_v51  ;;  %v3616_v51 = vld [vmem:[%s4173_s13 + $0xc] sm:$0xf] }
 0x2de   : > { %v3889_v56 = vpop.eup %3888  ;;  %v2958_v52 = vld [vmem:[%s4173_s13 + $0x48] sm:$0xf0] }
 0x2df   : > { %2932 = vmatmul.msk.bf16.vlgmr.msrb.gmra.mxu2 %vm611_vm3, %v715_v54  ;;  %v872_v55 = vpop.xlane.xlu0 %871  ;;  %v875_v57 = vmul.f32 %v3889_v56, %v3877_v23  ;;  %v3891_v58 = vpop.eup %3890  ;;  %v3613_v23 = vld [vmem:[%s4158_s17] sm:$0xff]  ;;  %v2961_v53 = vor.u32 %v3616_v51, %v2958_v52  ;;  %v3028_v54 = vld [vmem:[%s4173_s13 + $0x90] sm:$0xf]  ;;  %v3633_v56 = vld [vmem:[%s4173_s13 + $0x94] sm:$0xf] }
 0x2e0   : > { %3892 = vrcp.f32 %v872_v55  ;;  %v791_v63 = vmul.f32 %v3891_v58, %v4234_v18  ;;  %948 = vmatpush.bf16.msra.mxu0 %v3613_v23  ;;  %v3641_v55 = vld [vmem:[%s4173_s13 + $0xcc] sm:$0xf0]  ;;  %v3030_v58 = vld [vmem:[%s4173_s13 + $0xd0] sm:$0xf0]  ;;  %v3070_v51 = vld [vmem:[%s4173_s13 + $0xf8] sm:$0xf0] }
 0x2e1   : > { %3894 = vrcp.f32 %v788_v36  ;;  %v877_v61 = vpack.c.bf16 %v875_v57, %v875_v57  ;;  %v3020_v36 = vld [vmem:[%s4173_s13 + $0x88] sm:$0xf]  ;;  %v3029_v57 = vor.u32 %v3641_v55, %v3028_v54  ;;  %v2996_v54 = vld [vmem:[%s4173_s13 + $0x30] sm:$0xf] }
 0x2e2   : > { %v793_v4 = vpack.c.bf16 %v791_v63, %v791_v63  ;;  %v3021_v39 = vor.u32 %v3640_v37, %v3020_v36  ;;  %v3634_v63 = vld [vmem:[%s4173_s13 + $0x9c] sm:$0xf]  ;;  %v2982_v36 = vld [vmem:[%s4173_s13 + $0x60] sm:$0xf0]  ;;  %v2988_v37 = vld [vmem:[%s4173_s13 + $0x28] sm:$0xf] }
 0x2e3   : > { %v881_v2 = vunpack.c.l.b16 %v877_v61  ;;  %v3033_v61 = vor.u32 %v3633_v56, %v3030_v58  ;;  %v2989_v43 = vor.u32 %v3628_v38, %v2988_v37  ;;  %v3629_v55 = vld [vmem:[%s4173_s13 + $0x6c] sm:$0xf0]  ;;  %v3069_v56 = vor.u32 %v3646_v49, %v3068_v48  ;;  %v3621_v58 = vld [vmem:[%s4173_s13 + $0x34] sm:$0xf]  ;;  %v3655_v37 = vld [vmem:[%s4179_s25 + $0x40] sm:$0xff] }
 0x2e4   : > { %v797_v7 = vunpack.c.l.b16 %v793_v4  ;;  %1221 = vmatpush.bf16.msrb.mxu2 %v3021_v39  ;;  %1235 = vmatpush.bf16.msrb.mxu0 %v3025_v42  ;;  %v3617_v4 = vld [vmem:[%s4173_s13 + $0x14] sm:$0xf]  ;;  %v3620_v39 = vld [vmem:[%s4173_s13 + $0x2c] sm:$0xf]  ;;  %v2985_v42 = vor.u32 %v3619_v35, %v2982_v36  ;;  %v3686_v35 = vld [vmem:[%s4179_s25 + $0x138] sm:$0xff] }
 0x2e5   : > { %1263 = vmatpush.bf16.msrb.mxu3 %v3033_v61  ;;  %v2993_v14 = vor.u32 %v3620_v39, %v2990_v40  ;;  %v3630_v61 = vld [vmem:[%s4173_s13 + $0x74] sm:$0xf0]  ;;  %v3663_v38 = vld [vmem:[%s4179_s25 + $0x80] sm:$0xff]  ;;  %v3692_v48 = vld [vmem:[%s4179_s25 + $0x168] sm:$0xff] }
 0x2e6   : > { %v3893_v59 = vpop.eup %3892  ;;  %v3710_v36 = vld [vmem:[%s4179_s25 + $0x1f8] sm:$0xff]  ;;  %v3700_v49 = vld [vmem:[%s4179_s25 + $0x1a8] sm:$0xff] }
 0x2e7   : > { %v3895_v60 = vpop.eup %3894  ;;  %v876_v62 = vmul.f32 %v3893_v59, %v3879_v26  ;;  %v3036_v59 = vld [vmem:[%s4173_s13 + $0x98] sm:$0xf] }
 0x2e8   : > { %v792_v1 = vmul.f32 %v3895_v60, %v4230_v11  ;;  %1222 = vmatpush.bf16.msrb.mxu2 %v2957_v50  ;;  %1236 = vmatpush.bf16.msrb.mxu0 %v2961_v53  ;;  %v3642_v60 = vld [vmem:[%s4173_s13 + $0xd4] sm:$0xf0]  ;;  %v3638_v50 = vld [vmem:[%s4173_s13 + $0xbc] sm:$0xf]  ;;  %v3065_v53 = vor.u32 %v3637_v46, %v3062_v47  ;;  %v3683_v46 = vld [vmem:[%s4179_s25 + $0x120] sm:$0xff] }
 0x2e9   : > { %v878_v0 = vpack.c.bf16 %v876_v62, %v876_v62  ;;  %v3037_v62 = vor.u32 %v3642_v60, %v3036_v59  ;;  %v2998_v59 = vld [vmem:[%s4173_s13 + $0x70] sm:$0xf0]  ;;  %v3004_v60 = vld [vmem:[%s4173_s13 + $0x38] sm:$0xf]  ;;  %v3707_v47 = vld [vmem:[%s4179_s25 + $0x1e0] sm:$0xff] }
 0x2ea   : > { %v794_v6 = vpack.c.bf16 %v792_v1, %v792_v1  ;;  %v2964_v1 = vld [vmem:[%s4173_s13 + $0x10] sm:$0xf]  ;;  %v3694_v39 = vld [vmem:[%s4179_s25 + $0x178] sm:$0xff] }
 0x2eb   : > { %v882_v3 = vunpack.c.l.b16 %v878_v0  ;;  %v3038_v0 = vld [vmem:[%s4173_s13 + $0xd8] sm:$0xf0] }
 0x2ec   : > { %v798_v8 = vunpack.c.l.b16 %v794_v6  ;;  %v3702_v40 = vld [vmem:[%s4179_s25 + $0x1b8] sm:$0xff] }
 0x2ed   : > { %v883_v5 = vpack.c.b16 %v882_v3, %v881_v2  ;;  %v3041_v2 = vor.u32 %v3634_v63, %v3038_v0  ;;  %v3625_v3 = vld [vmem:[%s4173_s13 + $0x4c] sm:$0xf0]  ;;  %v3006_v63 = vld [vmem:[%s4173_s13 + $0x78] sm:$0xf0]  ;;  %v2997_v0 = vor.u32 %v3629_v55, %v2996_v54 }
 0x2ee   : > { %v799_v10 = vpack.c.b16 %v798_v8, %v797_v7  ;;  %v2965_v6 = vor.u32 %v3625_v3, %v2964_v1  ;;  %v2972_v8 = vld [vmem:[%s4173_s13 + $0x18] sm:$0xf]  ;;  %v3001_v1 = vor.u32 %v3621_v58, %v2998_v59  ;;  %v3681_v54 = vld [vmem:[%s4179_s25 + $0x110] sm:$0xff]  ;;  %v3680_v58 = vld [vmem:[%s4179_s25 + $0x108] sm:$0xff] }
 0x2ef   : > { %2936 = vmatmul.msk.bf16.vlgmr.msra.gmra.mxu2 %vm611_vm3, %v883_v5  ;;  %v2966_v5 = vld [vmem:[%s4173_s13 + $0x50] sm:$0xf0]  ;;  %v3704_v59 = vld [vmem:[%s4179_s25 + $0x1c8] sm:$0xff] }
 0x2f0   : > { %1277 = vmatpush.bf16.msra.mxu2 %v3037_v62  ;;  %v2969_v7 = vor.u32 %v3617_v4, %v2966_v5  ;;  %v3622_v62 = vld [vmem:[%s4173_s13 + $0x3c] sm:$0xf]  ;;  %v3705_v55 = vld [vmem:[%s4179_s25 + $0x1d0] sm:$0xff] }
 0x2f1   : > { %v3009_v3 = vor.u32 %v3622_v62, %v3006_v63  ;;  %v3654_v4 = vld [vmem:[%s4179_s25 + $0x38] sm:$0xff]  ;;  %v3679_v62 = vld [vmem:[%s4179_s25 + $0x100] sm:$0xff] }
 0x2f2   : > { %v801_v9 = vpop.permute.xlu0 %800  ;;  %1264 = vmatpush.bf16.msrb.mxu3 %v2969_v7  ;;  %v3678_v5 = vld [vmem:[%s4179_s25 + $0xf8] sm:$0xff]  ;;  %v3703_v63 = vld [vmem:[%s4179_s25 + $0x1c0] sm:$0xff] }
 0x2f3   : > { %813 = vmatpush.bf16.msrb.mxu1 %v801_v9  ;;  %v3626_v9 = vld [vmem:[%s4173_s13 + $0x54] sm:$0xf0] }
 0x2f4   : > { %v3670_v7 = vld [vmem:[%s4179_s25 + $0xb8] sm:$0xff] }
 0x2f6   : > { %2934 = vmatmul.msk.bf16.vlgmr.msrb.gmra.mxu1 %vm611_vm3, %v799_v10  ;;  %v3618_v10 = vld [vmem:[%s4173_s13 + $0x1c] sm:$0xf] }
 0x2f7   : > { %1193 = vmatpush.bf16.msra.mxu1 %v3013_v34 }
 0x2fb   : > { %1194 = vmatpush.bf16.msra.mxu1 %v2949_v45  ;;  %v3645_v45 = vld [vmem:[%s4173_s13 + $0xec] sm:$0xf0] }
 0x2fc   : > { %v3061_v52 = vor.u32 %v3645_v45, %v3060_v44  ;;  %v3684_v44 = vld [vmem:[%s4179_s25 + $0x128] sm:$0xff] }
 0x2fd   : > { %v3708_v45 = vld [vmem:[%s4179_s25 + $0x1e8] sm:$0xff] }
 0x2ff   : > { %1249 = vmatpush.bf16.msrb.mxu1 %v3029_v57  ;;  %v3073_v57 = vor.u32 %v3638_v50, %v3070_v51  ;;  %v3682_v50 = vld [vmem:[%s4179_s25 + $0x118] sm:$0xff] }
 0x300   : > { %v3706_v51 = vld [vmem:[%s4179_s25 + $0x1d8] sm:$0xff] }
 0x303   : > { %1250 = vmatpush.bf16.msrb.mxu1 %v2965_v6  ;;  %v3662_v6 = vld [vmem:[%s4179_s25 + $0x78] sm:$0xff] }
 0x352   : > { %v656_v12 = vpop.f32.mrf.mxu2 }
 0x353   : > { %661 = vst.msk [vmem:[#allocation3] sm:$0xff] %vm590_vm2, %v656_v12  ;;  %v2973_v12 = vor.u32 %v3626_v9, %v2972_v8  ;;  %v3653_v8 = vld [vmem:[%s4179_s25 + $0x30] sm:$0xff] }
 0x354   : > { %v3677_v9 = vld [vmem:[%s4179_s25 + $0xf0] sm:$0xff] }
 0x355   : > { %1278 = vmatpush.bf16.msra.mxu2 %v2973_v12  ;;  %v3669_v12 = vld [vmem:[%s4179_s25 + $0xb0] sm:$0xff] }
 0x35a   : > { %v658_v13 = vpop.f32.mrf.mxu2 }
 0x35b   : > { %662 = vst.msk [vmem:[#allocation3 + $0x8] sm:$0xff] %vm590_vm2, %v658_v13  ;;  %v2974_v13 = vld [vmem:[%s4173_s13 + $0x58] sm:$0xf0] }
 0x362   : > { %v731_v11 = vpop.f32.mrf.mxu2 }
 0x363   : > { %738 = vrot.lane.b32.xlu2 %v731_v11, %s4003_s10  ;;  %v2977_v11 = vor.u32 %v3618_v10, %v2974_v13  ;;  %v3661_v10 = vld [vmem:[%s4179_s25 + $0x70] sm:$0xff]  ;;  %v3652_v13 = vld [vmem:[%s4179_s25 + $0x28] sm:$0xff] }
 0x36a   : > { %v733_v15 = vpop.f32.mrf.mxu2 }
 0x36b   : > { %740 = vrot.lane.b32.xlu2 %v733_v15, %s4003_s10 }
 0x372   : > { %v899_v16 = vpop.f32.mrf.mxu2 }
 0x373   : > { %906 = vrot.lane.b32.xlu1 %v899_v16, %s4004_s22  ;;  %v815_v17 = vpop.f32.mrf.mxu1  ;;  %v3862_v16 = vld [vmem:[%s4607_s15] ss:$0 sm:$0xff] }
 0x374   : > { %822 = vrot.lane.b32.xlu0 %v815_v17, %s4005_s2  ;;  %v3044_v17 = vld [vmem:[%s4173_s13 + $0xa0] sm:$0xf] }
 0x37a   : > { %v901_v18 = vpop.f32.mrf.mxu2 }
 0x37b   : > { %v817_v19 = vpop.f32.mrf.mxu1 }
 0x37c   : > { %908 = vrot.lane.b32.xlu0 %v901_v18, %s4004_s22  ;;  %824 = vrot.lane.b32.xlu2 %v817_v19, %s4005_s2  ;;  %v3643_v18 = vld [vmem:[%s4173_s13 + $0xdc] sm:$0xf0] }
 0x3bd   : > { %v739_v20 = vpop.permute.xlu2 %738 }
 0x3be   : > { %745 = vst.msk [vmem:[#allocation3] sm:$0xff] %vm744_vm4, %v739_v20  ;;  %v3635_v20 = vld [vmem:[%s4173_s13 + $0xa4] sm:$0xf] }
 0x3c5   : > { %v741_v21 = vpop.permute.xlu2 %740 }
 0x3c6   : > { %746 = vst.msk [vmem:[#allocation3 + $0x8] sm:$0xff] %vm744_vm4, %v741_v21  ;;  %v3046_v21 = vld [vmem:[%s4173_s13 + $0xe0] sm:$0xf0] }
 0x3d6   : > { %v825_v24 = vpop.permute.xlu2 %824 }
 0x3d7   : > { %830 = vst.msk [vmem:[#allocation3 + $0x8] sm:$0xff] %vm828_vm5, %v825_v24 }
 0x3e5   : > { %v907_v26 = vpop.permute.xlu1 %906 }
 0x3e6   : > { %v823_v25 = vpop.permute.xlu0 %822 }
 0x3e7   : > { %829 = vst.msk [vmem:[#allocation3] sm:$0xff] %vm828_vm5, %v823_v25  ;;  %v3644_v25 = vld [vmem:[%s4173_s13 + $0xe4] sm:$0xf0] }
 0x3e8   : > { %913 = vst.msk [vmem:[#allocation3] sm:$0xff] %vm912_vm6, %v907_v26  ;;  %v3636_v26 = vld [vmem:[%s4173_s13 + $0xac] sm:$0xf]  ;;  %v3053_v33 = vor.u32 %v3644_v25, %v3052_v22  ;;  %v3674_v22 = vld [vmem:[%s4179_s25 + $0xd8] sm:$0xff]  ;;  %v3649_v25 = vld [vmem:[%s4179_s25 + $0x10] sm:$0xff] }
 0x3ee   : > { %v909_v27 = vpop.permute.xlu0 %908 }
 0x3ef   : > { %914 = vst.msk [vmem:[#allocation3 + $0x8] sm:$0xff] %vm912_vm6, %v909_v27  ;;  %v915_v28 = vld [vmem:[#allocation3] sm:$0xff] }
 0x3f0   : > { %v3054_v27 = vld [vmem:[%s4173_s13 + $0xe8] sm:$0xf0] }
 0x3f1   : > { %v3057_v34 = vor.u32 %v3636_v26, %v3054_v27  ;;  %v3673_v26 = vld [vmem:[%s4179_s25 + $0xd0] sm:$0xff] }
 0x3f2   : > { %v3657_v27 = vld [vmem:[%s4179_s25 + $0x50] sm:$0xff] }
 0x3f6   : > { %v916_v29 = vld [vmem:[#allocation3 + $0x8] sm:$0xff] }
 0x3f7   : > { %v917_v30 = vpack.c.bf16 %v916_v29, %v915_v28  ;;  %v3045_v29 = vor.u32 %v3643_v18, %v3044_v17  ;;  %v3651_v17 = vld [vmem:[%s4179_s25 + $0x20] sm:$0xff] }
 0x3f8   : > { %v3675_v18 = vld [vmem:[%s4179_s25 + $0xe0] sm:$0xff] }
 0x3f9   : > { %2945 = vmatmul.msk.bf16.vlgmr.msra.gmra.mxu0 %vm559_vm1, %v917_v30  ;;  %v3049_v30 = vor.u32 %v3635_v20, %v3046_v21  ;;  %v3667_v20 = vld [vmem:[%s4179_s25 + $0xa0] sm:$0xff]  ;;  %v3650_v21 = vld [vmem:[%s4179_s25 + $0x18] sm:$0xff] }
 0x3fa   : > { %1291 = vmatpush.bf16.msra.mxu0 %v3041_v2  ;;  %v3005_v2 = vor.u32 %v3630_v61, %v3004_v60  ;;  %v3689_v60 = vld [vmem:[%s4179_s25 + $0x150] sm:$0xff] }
 0x3fb   : > { %v3697_v61 = vld [vmem:[%s4179_s25 + $0x190] sm:$0xff] }
 0x3fe   : > { %1292 = vmatpush.bf16.msra.mxu0 %v2977_v11  ;;  %v3676_v11 = vld [vmem:[%s4179_s25 + $0xe8] sm:$0xff] }
 0x476   : > { %v950_v15 = vpop.f32.mrf.mxu0 }
 0x477   : > { %v951_v23 = vadd.f32 %v3862_v16, %v950_v15  ;;  %v3660_v15 = vld [vmem:[%s4179_s25 + $0x68] sm:$0xff] }
 0x47e   : > { %v952_v19 = vpop.f32.mrf.mxu0 }
 0x47f   : > { %v953_v24 = vadd.f32 %v3862_v16, %v952_v19  ;;  %v3668_v16 = vld [vmem:[%s4179_s25 + $0xa8] sm:$0xff]  ;;  %v3659_v19 = vld [vmem:[%s4179_s25 + $0x60] sm:$0xff] }
 0x481   : > { %v4300_v28 = vpack.c.bf16 %v953_v24, %v951_v23  ;;  %v3658_v23 = vld [vmem:[%s4179_s25 + $0x58] sm:$0xff] }
 0x482   : > { %v3666_v24 = vld [vmem:[%s4179_s25 + $0x98] sm:$0xff] }
 0x483   : > { %3074 = vmatmul.msk.bf16.vlgmr.msra.gmra.mxu1 %vm559_vm1, %v4300_v28  ;;  %3075 = vmatmul.msk.bf16.vlgmr.msra.gmra.mxu3 %vm559_vm1, %v4300_v28 }
 0x484   : > { %3076 = vmatmul.msk.bf16.vlgmr.msrb.gmra.mxu2 %vm559_vm1, %v4300_v28  ;;  %3077 = vmatmul.msk.bf16.vlgmr.msrb.gmra.mxu0 %vm559_vm1, %v4300_v28 }
 0x485   : > { %1305 = vmatpush.bf16.msra.mxu1 %v3045_v29  ;;  %1319 = vmatpush.bf16.msra.mxu3 %v3049_v30  ;;  %v3665_v29 = vld [vmem:[%s4179_s25 + $0x90] sm:$0xff]  ;;  %v3648_v30 = vld [vmem:[%s4179_s25 + $0x8] sm:$0xff] }
 0x486   : > { %1333 = vmatpush.bf16.msrb.mxu2 %v3053_v33  ;;  %1347 = vmatpush.bf16.msrb.mxu0 %v3057_v34  ;;  %v3647_v33 = vld [vmem:[%s4179_s25] sm:$0xff] }
 0x487   : > { %v3671_v34 = vld [vmem:[%s4179_s25 + $0xc0] sm:$0xff] }
 0x489   : > { %1306 = vmatpush.bf16.msra.mxu1 %v2981_v41  ;;  %1320 = vmatpush.bf16.msra.mxu3 %v2985_v42  ;;  %v3685_v41 = vld [vmem:[%s4179_s25 + $0x130] sm:$0xff] }
 0x48a   : > { %1334 = vmatpush.bf16.msrb.mxu2 %v2989_v43  ;;  %1348 = vmatpush.bf16.msrb.mxu0 %v2993_v14  ;;  %v3709_v42 = vld [vmem:[%s4179_s25 + $0x1f0] sm:$0xff] }
 0x48b   : > { %v3693_v43 = vld [vmem:[%s4179_s25 + $0x170] sm:$0xff] }
 0x48c   : > { %v3701_v14 = vld [vmem:[%s4179_s25 + $0x1b0] sm:$0xff] }
 0x493   : > { %3078 = vmatmul.msk.bf16.vlgmr.msrb.gmra.mxu1 %vm559_vm1, %v4300_v28  ;;  %3079 = vmatmul.msk.bf16.vlgmr.msrb.gmra.mxu3 %vm559_vm1, %v4300_v28 }
 0x494   : > { %3080 = vmatmul.msk.bf16.vlgmr.msra.gmra.mxu2 %vm559_vm1, %v4300_v28  ;;  %3081 = vmatmul.msk.bf16.vlgmr.msra.gmra.mxu0 %vm559_vm1, %v4300_v28 }
 0x495   : > { %1361 = vmatpush.bf16.msrb.mxu1 %v3061_v52  ;;  %1375 = vmatpush.bf16.msrb.mxu3 %v3065_v53  ;;  %v3691_v52 = vld [vmem:[%s4179_s25 + $0x160] sm:$0xff] }
 0x496   : > { %1389 = vmatpush.bf16.msra.mxu2 %v3069_v56  ;;  %1403 = vmatpush.bf16.msra.mxu0 %v3073_v57  ;;  %v3699_v53 = vld [vmem:[%s4179_s25 + $0x1a0] sm:$0xff]  ;;  %v3690_v56 = vld [vmem:[%s4179_s25 + $0x158] sm:$0xff] }
 0x497   : > { %v3698_v57 = vld [vmem:[%s4179_s25 + $0x198] sm:$0xff] }
 0x499   : > { %1362 = vmatpush.bf16.msrb.mxu1 %v2997_v0  ;;  %1376 = vmatpush.bf16.msrb.mxu3 %v3001_v1  ;;  %v3688_v0 = vld [vmem:[%s4179_s25 + $0x148] sm:$0xff] }
 0x49a   : > { %1390 = vmatpush.bf16.msra.mxu2 %v3005_v2  ;;  %1404 = vmatpush.bf16.msra.mxu0 %v3009_v3  ;;  %v3696_v1 = vld [vmem:[%s4179_s25 + $0x188] sm:$0xff]  ;;  %v3687_v2 = vld [vmem:[%s4179_s25 + $0x140] sm:$0xff] }
 0x49b   : > { %v3695_v3 = vld [vmem:[%s4179_s25 + $0x180] sm:$0xff] }
 0x4a3   : > { %3082 = vmatmul.msk.bf16.vlgmr.msra.gmra.mxu1 %vm559_vm1, %v4300_v28  ;;  %3083 = vmatmul.msk.bf16.vlgmr.msra.gmra.mxu3 %vm559_vm1, %v4300_v28 }
 0x4a4   : > { %3084 = vmatmul.msk.bf16.vlgmr.msrb.gmra.mxu2 %vm559_vm1, %v4300_v28  ;;  %3085 = vmatmul.msk.bf16.vlgmr.msrb.gmra.mxu0 %vm559_vm1, %v4300_v28 }
 0x4a5   : > { %2487 = vmatpush.bf16.msra.mxu1 %v3654_v4  ;;  %2529 = vmatpush.bf16.msrb.mxu0 %v3678_v5  ;;  %v4423_v4 = vld [vmem:[%s4168_s0] sm:$0xff] }
 0x4a6   : > { %2501 = vmatpush.bf16.msra.mxu3 %v3662_v6  ;;  %2515 = vmatpush.bf16.msrb.mxu2 %v3670_v7  ;;  %v992_v7 = vperm.slane %v4423_v4, 0 }
 0x4a9   : > { %2488 = vmatpush.bf16.msra.mxu1 %v3653_v8  ;;  %2530 = vmatpush.bf16.msrb.mxu0 %v3677_v9  ;;  %v995_v8 = vperm.slane %v4423_v4, 3 }
 0x4aa   : > { %2502 = vmatpush.bf16.msra.mxu3 %v3661_v10  ;;  %2516 = vmatpush.bf16.msrb.mxu2 %v3669_v12 }
 0x4ad   : > { %2489 = vmatpush.bf16.msra.mxu1 %v3652_v13  ;;  %2531 = vmatpush.bf16.msrb.mxu0 %v3676_v11 }
 0x4ae   : > { %2503 = vmatpush.bf16.msra.mxu3 %v3660_v15  ;;  %2517 = vmatpush.bf16.msrb.mxu2 %v3668_v16  ;;  %v993_v15 = vperm.slane %v4423_v4, 1 }
 0x4b1   : > { %2490 = vmatpush.bf16.msra.mxu1 %v3651_v17  ;;  %2532 = vmatpush.bf16.msrb.mxu0 %v3675_v18  ;;  %v994_v18 = vperm.slane %v4423_v4, 2 }
 0x4b2   : > { %2504 = vmatpush.bf16.msra.mxu3 %v3659_v19  ;;  %2518 = vmatpush.bf16.msrb.mxu2 %v3667_v20 }
 0x4b3   : > { %3086 = vmatmul.msk.bf16.vlgmr.msrb.gmra.mxu1 %vm559_vm1, %v4300_v28  ;;  %3087 = vmatmul.msk.bf16.vlgmr.msrb.gmra.mxu3 %vm559_vm1, %v4300_v28 }
 0x4b4   : > { %3088 = vmatmul.msk.bf16.vlgmr.msra.gmra.mxu2 %vm559_vm1, %v4300_v28  ;;  %3089 = vmatmul.msk.bf16.vlgmr.msra.gmra.mxu0 %vm559_vm1, %v4300_v28  ;;  %v3672_v28 = vld [vmem:[%s4179_s25 + $0xc8] sm:$0xff] }
 0x4b5   : > { %2491 = vmatpush.bf16.msra.mxu1 %v3650_v21  ;;  %2533 = vmatpush.bf16.msrb.mxu0 %v3674_v22 }
 0x4b6   : > { %2505 = vmatpush.bf16.msra.mxu3 %v3658_v23  ;;  %2519 = vmatpush.bf16.msrb.mxu2 %v3666_v24  ;;  %v3718_v24 = vld [vmem:[%s4179_s25 + $0x238] sm:$0xff] }
 0x4b9   : > { %2492 = vmatpush.bf16.msra.mxu1 %v3649_v25  ;;  %2534 = vmatpush.bf16.msrb.mxu0 %v3673_v26 }
 0x4ba   : > { %2506 = vmatpush.bf16.msra.mxu3 %v3657_v27  ;;  %2520 = vmatpush.bf16.msrb.mxu2 %v3665_v29  ;;  %v3742_v27 = vld [vmem:[%s4179_s25 + $0x2f8] sm:$0xff] }
 0x4bd   : > { %2493 = vmatpush.bf16.msra.mxu1 %v3648_v30  ;;  %2535 = vmatpush.bf16.msrb.mxu0 %v3672_v28 }
 0x4be   : > { %2507 = vmatpush.bf16.msra.mxu3 %v3656_v31  ;;  %2521 = vmatpush.bf16.msrb.mxu2 %v3664_v32 }
 0x4c1   : > { %2494 = vmatpush.bf16.msra.mxu1 %v3647_v33  ;;  %2536 = vmatpush.bf16.msrb.mxu0 %v3671_v34 }
 0x4c2   : > { %2508 = vmatpush.bf16.msra.mxu3 %v3655_v37  ;;  %2522 = vmatpush.bf16.msrb.mxu2 %v3663_v38 }
 0x4c5   : > { %2543 = vmatpush.bf16.msrb.mxu1 %v3686_v35  ;;  %2585 = vmatpush.bf16.msra.mxu0 %v3710_v36  ;;  %v3717_v35 = vld [vmem:[%s4179_s25 + $0x230] sm:$0xff] }
 0x4c6   : > { %2557 = vmatpush.bf16.msrb.mxu3 %v3694_v39  ;;  %2571 = vmatpush.bf16.msra.mxu2 %v3702_v40  ;;  %v3741_v39 = vld [vmem:[%s4179_s25 + $0x2f0] sm:$0xff] }
 0x4c9   : > { %2544 = vmatpush.bf16.msrb.mxu1 %v3685_v41  ;;  %2586 = vmatpush.bf16.msra.mxu0 %v3709_v42  ;;  %v3726_v42 = vld [vmem:[%s4179_s25 + $0x278] sm:$0xff] }
 0x4ca   : > { %2558 = vmatpush.bf16.msrb.mxu3 %v3693_v43  ;;  %2572 = vmatpush.bf16.msra.mxu2 %v3701_v14  ;;  %v996_v14 = vperm.slane %v4423_v4, 4 }
 0x4cd   : > { %2545 = vmatpush.bf16.msrb.mxu1 %v3684_v44  ;;  %2587 = vmatpush.bf16.msra.mxu0 %v3708_v45  ;;  %v3734_v44 = vld [vmem:[%s4179_s25 + $0x2b8] sm:$0xff] }
 0x4ce   : > { %2559 = vmatpush.bf16.msrb.mxu3 %v3692_v48  ;;  %2573 = vmatpush.bf16.msra.mxu2 %v3700_v49  ;;  %v3740_v48 = vld [vmem:[%s4179_s25 + $0x2e8] sm:$0xff] }
 0x4d1   : > { %2546 = vmatpush.bf16.msrb.mxu1 %v3683_v46  ;;  %2588 = vmatpush.bf16.msra.mxu0 %v3707_v47  ;;  %v999_v46 = vperm.slane %v4423_v4, 7  ;;  %v3716_v47 = vld [vmem:[%s4179_s25 + $0x228] sm:$0xff] }
 0x4d2   : > { %2560 = vmatpush.bf16.msrb.mxu3 %v3691_v52  ;;  %2574 = vmatpush.bf16.msra.mxu2 %v3699_v53  ;;  %v3733_v53 = vld [vmem:[%s4179_s25 + $0x2b0] sm:$0xff] }
 0x4d5   : > { %2547 = vmatpush.bf16.msrb.mxu1 %v3682_v50  ;;  %2589 = vmatpush.bf16.msra.mxu0 %v3706_v51  ;;  %v3725_v50 = vld [vmem:[%s4179_s25 + $0x270] sm:$0xff] }
 0x4d6   : > { %2561 = vmatpush.bf16.msrb.mxu3 %v3690_v56  ;;  %2575 = vmatpush.bf16.msra.mxu2 %v3698_v57  ;;  %v3715_v56 = vld [vmem:[%s4179_s25 + $0x220] sm:$0xff]  ;;  %v997_v57 = vperm.slane %v4423_v4, 5 }
 0x4d9   : > { %2548 = vmatpush.bf16.msrb.mxu1 %v3681_v54  ;;  %2590 = vmatpush.bf16.msra.mxu0 %v3705_v55 }
 0x4da   : > { %2562 = vmatpush.bf16.msrb.mxu3 %v3689_v60  ;;  %2576 = vmatpush.bf16.msra.mxu2 %v3697_v61  ;;  %v3739_v60 = vld [vmem:[%s4179_s25 + $0x2e0] sm:$0xff]  ;;  %v998_v61 = vperm.slane %v4423_v4, 6 }
 0x4dd   : > { %2549 = vmatpush.bf16.msrb.mxu1 %v3680_v58  ;;  %2591 = vmatpush.bf16.msra.mxu0 %v3704_v59 }
 0x4de   : > { %2563 = vmatpush.bf16.msrb.mxu3 %v3688_v0  ;;  %2577 = vmatpush.bf16.msra.mxu2 %v3696_v1 }
 0x4e1   : > { %2550 = vmatpush.bf16.msrb.mxu1 %v3679_v62  ;;  %2592 = vmatpush.bf16.msra.mxu0 %v3703_v63  ;;  %v3724_v63 = vld [vmem:[%s4179_s25 + $0x268] sm:$0xff] }
 0x4e2   : > { %2564 = vmatpush.bf16.msrb.mxu3 %v3687_v2  ;;  %2578 = vmatpush.bf16.msra.mxu2 %v3695_v3  ;;  %v3732_v2 = vld [vmem:[%s4179_s25 + $0x2a8] sm:$0xff] }
 0x500   : > { %v1196_v5 = vpop.f32.mrf.mxu1 }
 0x501   : > { %v1238_v6 = vpop.f32.mrf.mxu0  ;;  %v1197_v10 = vadd.f32 %v1196_v5, %v992_v7 }
 0x502   : > { %v1239_v13 = vadd.f32 %v1238_v6, %v995_v8  ;;  %v3714_v6 = vld [vmem:[%s4179_s25 + $0x218] sm:$0xff] }
 0x503   : > { %v1411_v20 = vmax.f32 %v1197_v10, 0.0 }
 0x504   : > { %v1414_v22 = vmax.f32 %v1239_v13, 0.0  ;;  %v3723_v13 = vld [vmem:[%s4179_s25 + $0x260] sm:$0xff] }
 0x506   : > { %v1210_v9 = vpop.f32.mrf.mxu3 }
 0x507   : > { %v1224_v12 = vpop.f32.mrf.mxu2  ;;  %v1211_v25 = vadd.f32 %v1210_v9, %v993_v15  ;;  %v3738_v9 = vld [vmem:[%s4179_s25 + $0x2d8] sm:$0xff] }
 0x508   : > { %v1198_v11 = vpop.f32.mrf.mxu1  ;;  %v1225_v29 = vadd.f32 %v1224_v12, %v994_v18 }
 0x509   : > { %v1199_v16 = vadd.f32 %v1198_v11, %v992_v7  ;;  %v1240_v17 = vpop.f32.mrf.mxu0  ;;  %v1412_v36 = vmax.f32 %v1211_v25, 0.0 }
 0x50a   : > { %v1241_v19 = vadd.f32 %v1240_v17, %v995_v8  ;;  %v1413_v40 = vmax.f32 %v1225_v29, 0.0 }
 0x50b   : > { %v1427_v21 = vmax.f32 %v1199_v16, 0.0  ;;  %v3731_v16 = vld [vmem:[%s4179_s25 + $0x2a0] sm:$0xff] }
 0x50c   : > { %v1430_v23 = vmax.f32 %v1241_v19, 0.0 }
 0x50d   : > { %v1443_v26 = vpack.c.bf16 %v1427_v21, %v1411_v20  ;;  %v3713_v20 = vld [vmem:[%s4179_s25 + $0x210] sm:$0xff] }
 0x50e   : > { %v1446_v30 = vpack.c.bf16 %v1430_v23, %v1414_v22  ;;  %v1212_v28 = vpop.f32.mrf.mxu3 }
 0x50f   : > { %v1213_v31 = vadd.f32 %v1212_v28, %v993_v15  ;;  %v1226_v32 = vpop.f32.mrf.mxu2  ;;  %2495 = vmatmul.bf16.vlgmr.msra.gmra.mxu1 %v1443_v26  ;;  %v3730_v28 = vld [vmem:[%s4179_s25 + $0x298] sm:$0xff] }
 0x510   : > { %v1227_v33 = vadd.f32 %v1226_v32, %v994_v18  ;;  %2537 = vmatmul.bf16.vlgmr.msrb.gmra.mxu0 %v1446_v30  ;;  %2599 = vmatpush.bf16.msra.mxu1 %v3718_v24  ;;  %v1252_v34 = vpop.f32.mrf.mxu1  ;;  %v4452_v18 = vld [vmem:[%s4168_s0 + $0x8] sm:$0xff]  ;;  %v3737_v24 = vld [vmem:[%s4179_s25 + $0x2d0] sm:$0xff] }
 0x511   : > { %v1428_v37 = vmax.f32 %v1213_v31, 0.0  ;;  %2641 = vmatpush.bf16.msrb.mxu0 %v3742_v27  ;;  %v1294_v38 = vpop.f32.mrf.mxu0  ;;  %v1253_v51 = vadd.f32 %v1252_v34, %v996_v14  ;;  %v3722_v27 = vld [vmem:[%s4179_s25 + $0x258] sm:$0xff]  ;;  %v1000_v30 = vperm.slane %v4452_v18, 0  ;;  %v1003_v32 = vperm.slane %v4452_v18, 3  ;;  %v3736_v34 = vld [vmem:[%s4179_s25 + $0x2c8] sm:$0xff] }
 0x512   : > { %v1429_v41 = vmax.f32 %v1227_v33, 0.0  ;;  %v1295_v54 = vadd.f32 %v1294_v38, %v999_v46  ;;  %v3712_v33 = vld [vmem:[%s4179_s25 + $0x208] sm:$0xff] }
 0x513   : > { %v1444_v43 = vpack.c.bf16 %v1428_v37, %v1412_v36  ;;  %v1415_v0 = vmax.f32 %v1253_v51, 0.0  ;;  %v3721_v36 = vld [vmem:[%s4179_s25 + $0x250] sm:$0xff] }
 0x514   : > { %v1445_v45 = vpack.c.bf16 %v1429_v41, %v1413_v40  ;;  %2600 = vmatpush.bf16.msra.mxu1 %v3717_v35  ;;  %v1418_v3 = vmax.f32 %v1295_v54, 0.0 }
 0x515   : > { %2642 = vmatpush.bf16.msrb.mxu0 %v3741_v39  ;;  %2509 = vmatmul.bf16.vlgmr.msra.gmra.mxu3 %v1444_v43  ;;  %v3729_v39 = vld [vmem:[%s4179_s25 + $0x290] sm:$0xff]  ;;  %v1001_v43 = vperm.slane %v4452_v18, 1 }
 0x516   : > { %2523 = vmatmul.bf16.vlgmr.msrb.gmra.mxu2 %v1445_v45  ;;  %2613 = vmatpush.bf16.msra.mxu3 %v3726_v42  ;;  %v1266_v49 = vpop.f32.mrf.mxu3  ;;  %v3711_v42 = vld [vmem:[%s4179_s25 + $0x200] sm:$0xff] }
 0x517   : > { %2627 = vmatpush.bf16.msrb.mxu2 %v3734_v44  ;;  %v1280_v52 = vpop.f32.mrf.mxu2  ;;  %v1267_v7 = vadd.f32 %v1266_v49, %v997_v57  ;;  %v3735_v45 = vld [vmem:[%s4179_s25 + $0x2c0] sm:$0xff]  ;;  %v3774_v49 = vld [vmem:[%s4179_s25 + $0x3f8] sm:$0xff] }
 0x518   : > { %2601 = vmatpush.bf16.msra.mxu1 %v3716_v47  ;;  %v1254_v55 = vpop.f32.mrf.mxu1  ;;  %v1281_v4 = vadd.f32 %v1280_v52, %v998_v61  ;;  %v1002_v47 = vperm.slane %v4452_v18, 2 }
 0x519   : > { %2643 = vmatpush.bf16.msrb.mxu0 %v3740_v48  ;;  %v1255_v58 = vadd.f32 %v1254_v55, %v996_v14  ;;  %v1296_v59 = vpop.f32.mrf.mxu0  ;;  %v1416_v21 = vmax.f32 %v1267_v7, 0.0 }
 0x51a   : > { %v1297_v62 = vadd.f32 %v1296_v59, %v999_v46  ;;  %2614 = vmatpush.bf16.msra.mxu3 %v3725_v50  ;;  %v1417_v25 = vmax.f32 %v1281_v4, 0.0  ;;  %v3750_v46 = vld [vmem:[%s4179_s25 + $0x338] sm:$0xff]  ;;  %v3720_v50 = vld [vmem:[%s4179_s25 + $0x248] sm:$0xff] }
 0x51b   : > { %v1431_v1 = vmax.f32 %v1255_v58, 0.0  ;;  %2628 = vmatpush.bf16.msrb.mxu2 %v3733_v53  ;;  %v3728_v53 = vld [vmem:[%s4179_s25 + $0x288] sm:$0xff]  ;;  %v3749_v58 = vld [vmem:[%s4179_s25 + $0x330] sm:$0xff] }
 0x51c   : > { %v1434_v5 = vmax.f32 %v1297_v62, 0.0  ;;  %2602 = vmatpush.bf16.msra.mxu1 %v3715_v56  ;;  %v3773_v62 = vld [vmem:[%s4179_s25 + $0x3f0] sm:$0xff] }
 0x51d   : > { %v1447_v8 = vpack.c.bf16 %v1431_v1, %v1415_v0  ;;  %2644 = vmatpush.bf16.msrb.mxu0 %v3739_v60 }
 0x51e   : > { %v1450_v10 = vpack.c.bf16 %v1434_v5, %v1418_v3  ;;  %2615 = vmatpush.bf16.msra.mxu3 %v3724_v63  ;;  %v1268_v12 = vpop.f32.mrf.mxu3  ;;  %v3719_v63 = vld [vmem:[%s4179_s25 + $0x240] sm:$0xff]  ;;  %v3758_v3 = vld [vmem:[%s4179_s25 + $0x378] sm:$0xff] }
 0x51f   : > { %2629 = vmatpush.bf16.msrb.mxu2 %v3732_v2  ;;  %v1269_v11 = vadd.f32 %v1268_v12, %v997_v57  ;;  %v1282_v15 = vpop.f32.mrf.mxu2  ;;  %2551 = vmatmul.bf16.vlgmr.msrb.gmra.mxu1 %v1447_v8  ;;  %v3727_v2 = vld [vmem:[%s4179_s25 + $0x280] sm:$0xff]  ;;  %v3772_v12 = vld [vmem:[%s4179_s25 + $0x3e8] sm:$0xff] }
 0x520   : > { %v1283_v17 = vadd.f32 %v1282_v15, %v998_v61  ;;  %2593 = vmatmul.bf16.vlgmr.msra.gmra.mxu0 %v1450_v10  ;;  %2603 = vmatpush.bf16.msra.mxu1 %v3714_v6  ;;  %v1308_v19 = vpop.f32.mrf.mxu1  ;;  %v3766_v6 = vld [vmem:[%s4179_s25 + $0x3b8] sm:$0xff] }
 0x521   : > { %v1432_v22 = vmax.f32 %v1269_v11, 0.0  ;;  %2645 = vmatpush.bf16.msrb.mxu0 %v3738_v9  ;;  %v1350_v23 = vpop.f32.mrf.mxu0  ;;  %v1309_v37 = vadd.f32 %v1308_v19, %v1000_v30  ;;  %v3748_v9 = vld [vmem:[%s4179_s25 + $0x328] sm:$0xff]  ;;  %v3757_v11 = vld [vmem:[%s4179_s25 + $0x370] sm:$0xff]  ;;  %v3747_v19 = vld [vmem:[%s4179_s25 + $0x320] sm:$0xff] }
 0x522   : > { %v1433_v26 = vmax.f32 %v1283_v17, 0.0  ;;  %2616 = vmatpush.bf16.msra.mxu3 %v3723_v13  ;;  %v1351_v40 = vadd.f32 %v1350_v23, %v1003_v32  ;;  %v3764_v23 = vld [vmem:[%s4179_s25 + $0x3a8] sm:$0xff] }
 0x523   : > { %v1448_v29 = vpack.c.bf16 %v1432_v22, %v1416_v21  ;;  %2630 = vmatpush.bf16.msrb.mxu2 %v3731_v16  ;;  %v1419_v51 = vmax.f32 %v1309_v37, 0.0  ;;  %v3765_v16 = vld [vmem:[%s4179_s25 + $0x3b0] sm:$0xff]  ;;  %v3771_v21 = vld [vmem:[%s4179_s25 + $0x3e0] sm:$0xff]  ;;  %v3756_v22 = vld [vmem:[%s4179_s25 + $0x368] sm:$0xff]  ;;  %v1007_v37 = vperm.slane %v4452_v18, 7 }
 0x524   : > { %v1449_v31 = vpack.c.bf16 %v1433_v26, %v1417_v25  ;;  %2604 = vmatpush.bf16.msra.mxu1 %v3713_v20  ;;  %v1422_v54 = vmax.f32 %v1351_v40, 0.0  ;;  %v3770_v25 = vld [vmem:[%s4179_s25 + $0x3d8] sm:$0xff]  ;;  %v3768_v40 = vld [vmem:[%s4179_s25 + $0x3c8] sm:$0xff] }
 0x525   : > { %2646 = vmatpush.bf16.msrb.mxu0 %v3737_v24  ;;  %2565 = vmatmul.bf16.vlgmr.msrb.gmra.mxu3 %v1448_v29  ;;  %v3746_v24 = vld [vmem:[%s4179_s25 + $0x318] sm:$0xff] }
 0x526   : > { %2579 = vmatmul.bf16.vlgmr.msra.gmra.mxu2 %v1449_v31  ;;  %2617 = vmatpush.bf16.msra.mxu3 %v3722_v27  ;;  %v1322_v35 = vpop.f32.mrf.mxu3  ;;  %v3755_v27 = vld [vmem:[%s4179_s25 + $0x360] sm:$0xff]  ;;  %v3769_v31 = vld [vmem:[%s4179_s25 + $0x3d0] sm:$0xff] }
 0x527   : > { %2631 = vmatpush.bf16.msrb.mxu2 %v3730_v28  ;;  %v1336_v38 = vpop.f32.mrf.mxu2  ;;  %v1323_v56 = vadd.f32 %v1322_v35, %v1001_v43  ;;  %v3745_v28 = vld [vmem:[%s4179_s25 + $0x310] sm:$0xff] }
 0x528   : > { %2605 = vmatpush.bf16.msra.mxu1 %v3712_v33  ;;  %v1310_v41 = vpop.f32.mrf.mxu1  ;;  %v1337_v59 = vadd.f32 %v1336_v38, %v1002_v47  ;;  %v3754_v33 = vld [vmem:[%s4179_s25 + $0x358] sm:$0xff]  ;;  %v3744_v38 = vld [vmem:[%s4179_s25 + $0x308] sm:$0xff] }
 0x529   : > { %2647 = vmatpush.bf16.msrb.mxu0 %v3736_v34  ;;  %v1311_v14 = vadd.f32 %v1310_v41, %v1000_v30  ;;  %v1352_v44 = vpop.f32.mrf.mxu0  ;;  %v1420_v7 = vmax.f32 %v1323_v56, 0.0  ;;  %v3763_v30 = vld [vmem:[%s4179_s25 + $0x3a0] sm:$0xff]  ;;  %v1004_v34 = vperm.slane %v4452_v18, 4  ;;  %v3760_v56 = vld [vmem:[%s4179_s25 + $0x388] sm:$0xff] }
 0x52a   : > { %v1353_v48 = vadd.f32 %v1352_v44, %v1003_v32  ;;  %2618 = vmatpush.bf16.msra.mxu3 %v3721_v36  ;;  %v1421_v4 = vmax.f32 %v1337_v59, 0.0  ;;  %v3762_v36 = vld [vmem:[%s4179_s25 + $0x398] sm:$0xff] }
 0x52b   : > { %v1435_v52 = vmax.f32 %v1311_v14, 0.0  ;;  %2632 = vmatpush.bf16.msrb.mxu2 %v3729_v39  ;;  %v3761_v14 = vld [vmem:[%s4179_s25 + $0x390] sm:$0xff] }
 0x52c   : > { %v1438_v55 = vmax.f32 %v1353_v48, 0.0  ;;  %2606 = vmatpush.bf16.msra.mxu1 %v3711_v42  ;;  %v3753_v42 = vld [vmem:[%s4179_s25 + $0x350] sm:$0xff] }
 0x52d   : > { %v1451_v57 = vpack.c.bf16 %v1435_v52, %v1419_v51  ;;  %2648 = vmatpush.bf16.msrb.mxu0 %v3735_v45  ;;  %v1006_v51 = vperm.slane %v4452_v18, 6 }
 0x52e   : > { %v1454_v60 = vpack.c.bf16 %v1438_v55, %v1422_v54  ;;  %2619 = vmatpush.bf16.msra.mxu3 %v3720_v50  ;;  %v1324_v61 = vpop.f32.mrf.mxu3  ;;  %v3767_v50 = vld [vmem:[%s4179_s25 + $0x3c0] sm:$0xff] }
 0x52f   : > { %2633 = vmatpush.bf16.msrb.mxu2 %v3728_v53  ;;  %v1325_v0 = vadd.f32 %v1324_v61, %v1001_v43  ;;  %v1338_v1 = vpop.f32.mrf.mxu2  ;;  %2607 = vmatmul.bf16.vlgmr.msra.gmra.mxu1 %v1451_v57  ;;  %v3752_v53 = vld [vmem:[%s4179_s25 + $0x348] sm:$0xff] }
 0x530   : > { %2655 = vmatpush.bf16.msrb.mxu1 %v3750_v46  ;;  %v1339_v5 = vadd.f32 %v1338_v1, %v1002_v47  ;;  %2649 = vmatmul.bf16.vlgmr.msrb.gmra.mxu0 %v1454_v60  ;;  %v1364_v17 = vpop.f32.mrf.mxu1  ;;  %v3743_v46 = vld [vmem:[%s4179_s25 + $0x300] sm:$0xff]  ;;  %v1005_v47 = vperm.slane %v4452_v18, 5 }
 0x531   : > { %2697 = vmatpush.bf16.msra.mxu0 %v3774_v49  ;;  %v1436_v8 = vmax.f32 %v1325_v0, 0.0  ;;  %v1406_v20 = vpop.f32.mrf.mxu0  ;;  %v1365_v43 = vadd.f32 %v1364_v17, %v1004_v34  ;;  %v3759_v0 = vld [vmem:[%s4179_s25 + $0x380] sm:$0xff] }
 0x532   : > { %v1437_v10 = vmax.f32 %v1339_v5, 0.0  ;;  %2620 = vmatpush.bf16.msra.mxu3 %v3719_v63  ;;  %v1407_v44 = vadd.f32 %v1406_v20, %v1007_v37  ;;  %v3751_v63 = vld [vmem:[%s4179_s25 + $0x340] sm:$0xff] }
 0x533   : > { %v1452_v13 = vpack.c.bf16 %v1436_v8, %v1420_v7  ;;  %2634 = vmatpush.bf16.msrb.mxu2 %v3727_v2  ;;  %v1423_v54 = vmax.f32 %v1365_v43, 0.0 }
 0x534   : > { %2656 = vmatpush.bf16.msrb.mxu1 %v3749_v58  ;;  %v1453_v15 = vpack.c.bf16 %v1437_v10, %v1421_v4  ;;  %v1426_v57 = vmax.f32 %v1407_v44, 0.0 }
 0x535   : > { %2698 = vmatpush.bf16.msra.mxu0 %v3773_v62  ;;  %2621 = vmatmul.bf16.vlgmr.msra.gmra.mxu3 %v1452_v13 }
 0x536   : > { %2669 = vmatpush.bf16.msrb.mxu3 %v3758_v3  ;;  %2635 = vmatmul.bf16.vlgmr.msrb.gmra.mxu2 %v1453_v15  ;;  %v1378_v26 = vpop.f32.mrf.mxu3  ;;  %v3863_v15 = vld [vmem:[%s521_s27] ss:$0 sm:$0xff] }
 0x537   : > { %2683 = vmatpush.bf16.msra.mxu2 %v3766_v6  ;;  %v1392_v29 = vpop.f32.mrf.mxu2  ;;  %v1379_v59 = vadd.f32 %v1378_v26, %v1005_v47 }
 0x538   : > { %2657 = vmatpush.bf16.msrb.mxu1 %v3748_v9  ;;  %v1366_v32 = vpop.f32.mrf.mxu1  ;;  %v1393_v61 = vadd.f32 %v1392_v29, %v1006_v51 }
 0x539   : > { %2699 = vmatpush.bf16.msra.mxu0 %v3772_v12  ;;  %v1408_v35 = vpop.f32.mrf.mxu0  ;;  %v1367_v39 = vadd.f32 %v1366_v32, %v1004_v34  ;;  %v1424_v2 = vmax.f32 %v1379_v59, 0.0 }
 0x53a   : > { %2670 = vmatpush.bf16.msrb.mxu3 %v3757_v11  ;;  %v1409_v41 = vadd.f32 %v1408_v35, %v1007_v37  ;;  %v1425_v3 = vmax.f32 %v1393_v61, 0.0 }
 0x53b   : > { %2684 = vmatpush.bf16.msra.mxu2 %v3765_v16  ;;  %v1439_v48 = vmax.f32 %v1367_v39, 0.0 }
 0x53c   : > { %2658 = vmatpush.bf16.msrb.mxu1 %v3747_v19  ;;  %v1442_v52 = vmax.f32 %v1409_v41, 0.0 }
 0x53d   : > { %2700 = vmatpush.bf16.msra.mxu0 %v3771_v21  ;;  %v1455_v60 = vpack.c.bf16 %v1439_v48, %v1423_v54 }
 0x53e   : > { %2671 = vmatpush.bf16.msrb.mxu3 %v3756_v22  ;;  %v1380_v45 = vpop.f32.mrf.mxu3  ;;  %v1458_v62 = vpack.c.bf16 %v1442_v52, %v1426_v57 }
 0x53f   : > { %2685 = vmatpush.bf16.msra.mxu2 %v3764_v23  ;;  %v1394_v49 = vpop.f32.mrf.mxu2  ;;  %v1381_v55 = vadd.f32 %v1380_v45, %v1005_v47 }
 0x540   : > { %2659 = vmatpush.bf16.msrb.mxu1 %v3746_v24  ;;  %v1395_v58 = vadd.f32 %v1394_v49, %v1006_v51 }
 0x541   : > { %2701 = vmatpush.bf16.msra.mxu0 %v3770_v25  ;;  %v1440_v18 = vmax.f32 %v1381_v55, 0.0 }
 0x542   : > { %2672 = vmatpush.bf16.msrb.mxu3 %v3755_v27  ;;  %v1441_v1 = vmax.f32 %v1395_v58, 0.0 }
 0x543   : > { %2686 = vmatpush.bf16.msra.mxu2 %v3763_v30  ;;  %v1456_v5 = vpack.c.bf16 %v1440_v18, %v1424_v2 }
 0x544   : > { %2660 = vmatpush.bf16.msrb.mxu1 %v3745_v28  ;;  %v1457_v6 = vpack.c.bf16 %v1441_v1, %v1425_v3 }
 0x545   : > { %2702 = vmatpush.bf16.msra.mxu0 %v3769_v31 }
 0x546   : > { %2673 = vmatpush.bf16.msrb.mxu3 %v3754_v33 }
 0x547   : > { %2687 = vmatpush.bf16.msra.mxu2 %v3762_v36 }
 0x548   : > { %2661 = vmatpush.bf16.msrb.mxu1 %v3744_v38 }
 0x549   : > { %2703 = vmatpush.bf16.msra.mxu0 %v3768_v40 }
 0x54a   : > { %2674 = vmatpush.bf16.msrb.mxu3 %v3753_v42 }
 0x54b   : > { %2688 = vmatpush.bf16.msra.mxu2 %v3761_v14 }
 0x54c   : > { %2662 = vmatpush.bf16.msrb.mxu1 %v3743_v46 }
 0x54d   : > { %2704 = vmatpush.bf16.msra.mxu0 %v3767_v50 }
 0x54e   : > { %2675 = vmatpush.bf16.msrb.mxu3 %v3752_v53 }
 0x54f   : > { %2689 = vmatpush.bf16.msra.mxu2 %v3760_v56  ;;  %2663 = vmatmul.bf16.vlgmr.msrb.gmra.mxu1 %v1455_v60 }
 0x550   : > { %2705 = vmatmul.bf16.vlgmr.msra.gmra.mxu0 %v1458_v62 }
 0x552   : > { %2676 = vmatpush.bf16.msrb.mxu3 %v3751_v63 }
 0x553   : > { %2690 = vmatpush.bf16.msra.mxu2 %v3759_v0 }
 0x555   : > { %2677 = vmatmul.bf16.vlgmr.msrb.gmra.mxu3 %v1456_v5 }
 0x556   : > { %2691 = vmatmul.bf16.vlgmr.msra.gmra.mxu2 %v1457_v6 }
 0x58c   : > { %v2496_v7 = vpop.f32.mrf.mxu1 }
 0x58d   : > { %v2538_v4 = vpop.f32.mrf.mxu0  ;;  %v2497_v17 = vadd.f32 %v3863_v15, %v2496_v7 }
 0x594   : > { %v2498_v10 = vpop.f32.mrf.mxu1 }
 0x595   : > { %v2540_v11 = vpop.f32.mrf.mxu0  ;;  %v2499_v25 = vadd.f32 %v3863_v15, %v2498_v10 }
 0x598   : > { %v2510_v8 = vpop.f32.mrf.mxu3 }
 0x599   : > { %v2524_v9 = vpop.f32.mrf.mxu2  ;;  %v2511_v19 = vadd.f32 %v2510_v8, %v2497_v17 }
 0x59b   : > { %v2525_v23 = vadd.f32 %v2524_v9, %v2511_v19 }
 0x59c   : > { %v2552_v16 = vpop.f32.mrf.mxu1 }
 0x59d   : > { %v2594_v22 = vpop.f32.mrf.mxu0  ;;  %v2539_v26 = vadd.f32 %v2538_v4, %v2525_v23 }
 0x59f   : > { %v2553_v30 = vadd.f32 %v2552_v16, %v2539_v26 }
 0x5a0   : > { %v2512_v12 = vpop.f32.mrf.mxu3 }
 0x5a1   : > { %v2526_v13 = vpop.f32.mrf.mxu2  ;;  %v2513_v27 = vadd.f32 %v2512_v12, %v2499_v25 }
 0x5a3   : > { %v2527_v28 = vadd.f32 %v2526_v13, %v2513_v27 }
 0x5a4   : > { %v2554_v24 = vpop.f32.mrf.mxu1 }
 0x5a5   : > { %v2596_v32 = vpop.f32.mrf.mxu0  ;;  %v2541_v35 = vadd.f32 %v2540_v11, %v2527_v28 }
 0x5a7   : > { %v2555_v37 = vadd.f32 %v2554_v24, %v2541_v35 }
 0x5a8   : > { %v2566_v20 = vpop.f32.mrf.mxu3 }
 0x5a9   : > { %v2580_v21 = vpop.f32.mrf.mxu2  ;;  %v2567_v33 = vadd.f32 %v2566_v20, %v2553_v30 }
 0x5ab   : > { %v2581_v36 = vadd.f32 %v2580_v21, %v2567_v33 }
 0x5ac   : > { %v2608_v34 = vpop.f32.mrf.mxu1 }
 0x5ad   : > { %v2595_v39 = vadd.f32 %v2594_v22, %v2581_v36  ;;  %v2650_v42 = vpop.f32.mrf.mxu0 }
 0x5af   : > { %v2609_v14 = vadd.f32 %v2608_v34, %v2595_v39 }
 0x5b0   : > { %v2568_v29 = vpop.f32.mrf.mxu3 }
 0x5b1   : > { %v2582_v31 = vpop.f32.mrf.mxu2  ;;  %v2569_v40 = vadd.f32 %v2568_v29, %v2555_v37 }
 0x5b3   : > { %v2583_v44 = vadd.f32 %v2582_v31, %v2569_v40 }
 0x5b4   : > { %v2610_v43 = vpop.f32.mrf.mxu1 }
 0x5b5   : > { %v2597_v46 = vadd.f32 %v2596_v32, %v2583_v44  ;;  %v2652_v50 = vpop.f32.mrf.mxu0 }
 0x5b7   : > { %v2611_v52 = vadd.f32 %v2610_v43, %v2597_v46 }
 0x5b8   : > { %v2622_v38 = vpop.f32.mrf.mxu3 }
 0x5b9   : > { %v2636_v41 = vpop.f32.mrf.mxu2  ;;  %v2623_v45 = vadd.f32 %v2622_v38, %v2609_v14 }
 0x5bb   : > { %v2637_v48 = vadd.f32 %v2636_v41, %v2623_v45 }
 0x5bd   : > { %v2651_v54 = vadd.f32 %v2650_v42, %v2637_v48 }
 0x5c0   : > { %v2624_v47 = vpop.f32.mrf.mxu3 }
 0x5c1   : > { %v2638_v49 = vpop.f32.mrf.mxu2  ;;  %v2625_v53 = vadd.f32 %v2624_v47, %v2611_v52 }
 0x5c3   : > { %v2639_v57 = vadd.f32 %v2638_v49, %v2625_v53 }
 0x5c5   : > { %v2653_v63 = vadd.f32 %v2652_v50, %v2639_v57 }
 0x5cc   : > { %v2664_v51 = vpop.f32.mrf.mxu1 }
 0x5cd   : > { %v2665_v55 = vadd.f32 %v2664_v51, %v2651_v54  ;;  %v2706_v60 = vpop.f32.mrf.mxu0 }
 0x5d4   : > { %v2666_v62 = vpop.f32.mrf.mxu1 }
 0x5d5   : > { %v2667_v0 = vadd.f32 %v2666_v62, %v2653_v63  ;;  %v2708_v7 = vpop.f32.mrf.mxu0 }
 0x5d8   : > { %v2678_v56 = vpop.f32.mrf.mxu3 }
 0x5d9   : > { %v2679_v58 = vadd.f32 %v2678_v56, %v2665_v55  ;;  %v2692_v59 = vpop.f32.mrf.mxu2 }
 0x5db   : > { %v2693_v61 = vadd.f32 %v2692_v59, %v2679_v58 }
 0x5dd   : > { %v2707_v18 = vadd.f32 %v2706_v60, %v2693_v61 }
 0x5df   : > { %v2711_v1 = vpack.c.bf16 %v2707_v18, %v2707_v18 }
 0x5e0   : > { %v2680_v2 = vpop.f32.mrf.mxu3 }
 0x5e1   : > { %2714 = vst.msk [vmem:[#allocation2] sm:$0xf] %vm2713_vm7, %v2711_v1  ;;  %v2681_v3 = vadd.f32 %v2680_v2, %v2667_v0  ;;  %v2694_v5 = vpop.f32.mrf.mxu2 }
 0x5e3   : > { %v2695_v6 = vadd.f32 %v2694_v5, %v2681_v3 }
 0x5e5   : > { %v2709_v8 = vadd.f32 %v2708_v7, %v2695_v6  ;;  %2719 = sbr.rel (%p3602_p1) target bundleno = 1518 (0x5ee), region = 68 }
 0x5e7   : > { %v2712_v9 = vpack.c.bf16 %v2709_v8, %v2709_v8 }
 0x5e9   : > { %2715 = vst.msk [vmem:[#allocation2 + $0x4] sm:$0xf] %vm2713_vm7, %v2712_v9 }
 0x5ea   : > { %v2720_v4 = vld [vmem:[#allocation2] sm:$0x1]  ;;  %vm2722_vm8 = vcmask 253952  }
 0x5eb   : > { %v2721_v10 = vunpack.c.l.bf16 %v2720_v4 }
 0x5ed   : > { %2723 = vst.msk [vmem:[%s4187_s4] sm:$0x1] %vm2722_vm8, %v2721_v10 }
 0x5ee PF: > { %s4608_s12 = sld [smem:[#allocation9_spill]]  ;;  %s2735_s24 = sshll.u32 %s4187_s4, 4  ;;  %s2736_s24 = int_to_ptr.vmem [resolvable:$true] %s2735_s24 }
 0x5ef   : > { %s4609_s19 = sld [smem:[#allocation22_spill]]  ;;  %s4612_s16 = sand.u32 1, %s3966_s14  }
 0x5f0   : > { %s2725_s21 = scalar_lea.sflag [#allocation5], %s4612_s16 }
 0x5f5   : > { %s4610_s23 = smov %s4609_s19  ;;  %s2733_s28 = scalar_lea.hbm %s4609_s19, %s4608_s12 }
 0x5f6   : > { %s2737_s30 = sshll.u32 %s2733_s28, 4  ;;  %s3916_s10 = scalar_lea.hbm %s4610_s23, 2  ;;  %s2738_s30 = int_to_ptr.hbm [resolvable:$true] %s2737_s30 }
 0x5f7   : > { %s3910_s11 = sshra.s32 %s2738_s30, 4  ;;  %s3911_s11 = int_to_ptr.hbm [resolvable:$true] %s3910_s11 }
 0x5f8   : > { %s3912_s18 = scalar_lea.hbm %s3911_s11, 1  ;;  %p3917_p6 = scmp.lt.s32.totalorder %s3911_s11, %s4610_s23 }
 0x5f9   : > { %p3913_p2 = scmp.ne.s32.totalorder %s3911_s11, %s3912_s18  ;;  %p3918_p7 = scmp.lt.s32.totalorder %s3916_s10, %s3912_s18 }
 0x5fb   : > { %p3914_p4 = pnand %p3913_p2, %p4110_p3  ;;  %p3919_p8 = por %p3918_p7, %p3917_p6 }
 0x5fd   : > { %p3915_p5 = pneg %p3914_p4 }
 0x5ff   : > { %p3920_p10 = pnand %p3919_p8, %p3915_p5 }
 0x601   : > { %3923 = shalt.err (!%p3920_p10)
}
 0x602   : > { %3775 = dma.vmem_to_hbm [thread:$0]  (%p4110_p3), %s2736_s24, 16, %s2738_s30, %s2725_s21  }
 0x603 PF: > { %s4613_s4 = sld [smem:[#allocation12_spill]] }
 0x604   : > { %s4614_s17 = sld [smem:[#allocation7_spill]] }
 0x609   : > { %p3781_p11 = scmp.ge.s32.totalorder %s4613_s4, 2 }
 0x60a   : > { %s2749_s15 = sand.u32 1, %s4614_s17  }
 0x60b   : > { %p3778_p12 = pnand %p3781_p11, %p4120_p9  ;;  %s2750_s0 = scalar_lea.sflag [#allocation5], %s2749_s15 }
 0x60d   : > { %p3779_p13 = pneg %p3778_p12 }
 0x60f   : > { %3957 = dma.done.wait (%p3779_p13), %s2750_s0, 16  }
 0x610   : > { %3959 = vsyncadd (%p3779_p13), %s2750_s0, 4294967280  ;;  %s23_s20 = sadd.s32 1, %s4613_s4   ;;  %s4616_s12 = sld [smem:[#allocation8_spill]] }
 0x611   : > { %p20_p0 = scmp.ge.s32.totalorder %s23_s20, 6   ;;  %s4617_s15 = sld [smem:[#allocation17_spill]] }
 0x612   : > { %s4618_s16 = sld [smem:[#allocation10_spill]]  ;;  %s4622_s13 = smov %s3966_s14 }
 0x613   : > { %s4619_s17 = sld [smem:[#allocation11_spill]]  ;;  %22 = sbr.rel (!%p20_p0) target bundleno = 11 (0xb), region = 130 }
 0x614   : > { %s4620_s18 = sld [smem:[#allocation13_spill]] }
 0x615   : > { %s4621_s19 = sld [smem:[#allocation15_spill]] }
 0x616   : > { %s4623_s14 = smov %s4616_s12 }
 0x618   :  { %2755 = vsyncpa [#allocation5], 1 }
 0x619   :  { %2757 = vsyncpa [#allocation5 + $0x1], 1 }

</bundles_post_ra>
